<compile_context>
chip_gen: v6e
topology: v6e:2x2x1
jax: 0.10.0
libtpu: 0.0.40
codegen_flags: <defaults>
</compile_context>

<pallas_src>
import math

import jax
import jax.numpy as jnp
from jax.experimental import pallas as pl
from jax.experimental.pallas import tpu as pltpu

# ----------------------------- config ---------------------------------------
B = 2          # batch
S = 8          # seq_len
D = 32         # d_model
H = 4          # heads
DK = D // H    # per-head dim
DFF = 2048     # FeedForward hidden (PyTorch default)
EPS = 1e-6
NEG = -1e9


# ----------------------------- kernel ---------------------------------------
def _encoder_kernel(x_ref, mask_ref,
                    a1_ref, g1_ref, a2_ref, g2_ref,
                    wqkv_ref, bqkv_ref, wo_ref, bo_ref,
                    b1_ref, b2_ref,
                    w1_hbm, w2t_hbm,
                    o_ref,
                    w1_vmem, w2t_vmem, dma_sem):
    R = B * S
    scale = 1.0 / math.sqrt(DK)

    # --- kick off FF-weight DMAs immediately: they stream under attention ---
    cp_w1 = pltpu.make_async_copy(w1_hbm, w1_vmem, dma_sem.at[0])
    cp_w2 = pltpu.make_async_copy(w2t_hbm, w2t_vmem, dma_sem.at[1])
    cp_w1.start()
    cp_w2.start()

    x = x_ref[...].reshape(R, D)            # (R, D), tokens stacked on sublanes
    mask = mask_ref[...]                    # (B, 1, S)

    # Hoist small params once (JAX does not CSE broadcast_in_dim).
    a1 = a1_ref[...]; g1 = g1_ref[...]
    a2 = a2_ref[...]; g2 = g2_ref[...]
    bqkv = bqkv_ref[...]; bo = bo_ref[...]
    b1 = b1_ref[...]; b2 = b2_ref[...]

    def layer_norm(v, alpha, bias):
        mean = jnp.mean(v, axis=-1, keepdims=True)
        # torch.std default: unbiased (divide by N-1)
        var = jnp.sum((v - mean) ** 2, axis=-1, keepdims=True) * (1.0 / (D - 1))
        inv = pl.reciprocal(jnp.sqrt(var) + EPS, approx=False)
        return alpha * (v - mean) * inv + bias

    # ---- sub-layer 1: fused-QKV multi-head self-attention (pre-norm) ----
    x2 = layer_norm(x, a1, g1)                                          # (R, D)
    qkv = jnp.dot(x2, wqkv_ref[...],
                  preferred_element_type=jnp.float32) + bqkv            # (R, 3D)

    def heads(base):
        # Stack the H lane-slices on a leading batch axis -> (B*H, S, DK).
        parts = [qkv[:, base + h * DK: base + (h + 1) * DK]
                 .reshape(B, 1, S, DK) for h in range(H)]
        return jnp.concatenate(parts, axis=1).reshape(B * H, S, DK)

    qh = heads(0)
    kh = heads(D)
    vh = heads(2 * D)

    # Batched scores: contraction on the last axes (no explicit transpose).
    scores = jnp.einsum('bqd,bkd->bqk', qh, kh,
                        preferred_element_type=jnp.float32) * scale     # (B*H,S,S)
    scores = scores.reshape(B, H, S, S)
    scores = jnp.where(mask[:, :, None, :] == 0.0, NEG, scores)         # key padding
    scores = scores.reshape(B * H, S, S)

    # One softmax for all batches*heads (denominator via exact reciprocal).
    m = jnp.max(scores, axis=-1, keepdims=True)
    p = jnp.exp(scores - m)
    denom = jnp.sum(p, axis=-1, keepdims=True)
    p = p * pl.reciprocal(denom, approx=False)

    ctx = jnp.einsum('bqk,bkd->bqd', p, vh,
                     preferred_element_type=jnp.float32)                # (B*H,S,DK)
    ctx = ctx.reshape(B, H, S, DK)
    concat = jnp.concatenate([ctx[:, h] for h in range(H)], axis=-1)    # (B, S, D)
    concat = concat.reshape(R, D)

    attn_out = jnp.dot(concat, wo_ref[...],
                       preferred_element_type=jnp.float32) + bo
    x = x + attn_out                                                    # residual

    # ---- sub-layer 2: feed-forward (pre-norm), FF weights just arrived ----
    x2 = layer_norm(x, a2, g2)

    cp_w1.wait()                                                        # W1 in VMEM
    hdn = jnp.dot(x2, w1_vmem[...],
                  preferred_element_type=jnp.float32) + b1              # (R, DFF)
    hdn = jnp.maximum(hdn, 0.0)                                         # ReLU

    cp_w2.wait()                                                        # W2^T in VMEM
    # W2 stored lane-dense as (D, DFF); contract both operands on DFF
    # (transposed-RHS matmul, same pattern the MXU consumes for q·k^T).
    ff = jax.lax.dot_general(hdn, w2t_vmem[...],
                             dimension_numbers=(((1,), (1,)), ((), ())),
                             preferred_element_type=jnp.float32) + b2
    out = x + ff                                                        # (R, D)

    o_ref[...] = out.reshape(B, S, D)


# ----------------------------- wrapper ---------------------------------------
def fuse_params(params):
    """One-time parameter preprocessing (hoisted out of the per-call path)."""
    (a1, g1, a2, g2, wq, bq, wk, bk, wv, bv, wo, bo, w1, b1, w2, b2) = params
    wqkv = jnp.concatenate([wq, wk, wv], axis=1)     # (D, 3D) fused projection
    bqkv = jnp.concatenate([bq, bk, bv], axis=1)     # (1, 3D)
    w2t = jnp.asarray(w2.T)                          # (D, DFF) lane-dense W2
    fused = (a1, g1, a2, g2, wqkv, bqkv, wo, bo, b1, b2, w1, w2t)
    return jax.block_until_ready(fused)


def encoder_layer(x, src_mask, fused_params):
    """x: (B, S, D) f32, src_mask: (B, 1, S) f32 (nonzero = keep)."""
    (a1, g1, a2, g2, wqkv, bqkv, wo, bo, b1, b2, w1, w2t) = fused_params

    def rep(shape):  # replicated (untiled) small parameter
        zeros = (0,) * len(shape)
        return pl.BlockSpec(shape, lambda b, z=zeros: z)

    in_specs = [
        pl.BlockSpec((B, S, D), lambda b: (0, 0, 0)),   # x (whole batch, 1 step)
        pl.BlockSpec((B, 1, S), lambda b: (0, 0, 0)),   # src_mask
        rep((1, D)), rep((1, D)),                       # norm1 alpha, bias
        rep((1, D)), rep((1, D)),                       # norm2 alpha, bias
        rep((D, 3 * D)), rep((1, 3 * D)),               # fused Wqkv, bqkv
        rep((D, D)), rep((1, D)),                       # Wo, bo
        rep((1, DFF)), rep((1, D)),                     # b1, b2
        pl.BlockSpec(memory_space=pl.ANY),              # W1  (manual DMA, overlapped)
        pl.BlockSpec(memory_space=pl.ANY),              # W2^T (manual DMA, overlapped)
    ]

    return pl.pallas_call(
        _encoder_kernel,
        out_shape=jax.ShapeDtypeStruct((B, S, D), jnp.float32),
        grid_spec=pltpu.PrefetchScalarGridSpec(
            num_scalar_prefetch=0,
            grid=(1,),                                   # batch folded on all chips
            in_specs=in_specs,
            out_specs=pl.BlockSpec((B, S, D), lambda b: (0, 0, 0)),
            scratch_shapes=[
                pltpu.VMEM((D, DFF), jnp.float32),       # W1 landing buffer
                pltpu.VMEM((D, DFF), jnp.float32),       # W2^T landing buffer
                pltpu.SemaphoreType.DMA((2,)),
            ],
        ),
        compiler_params=pltpu.CompilerParams(
            dimension_semantics=("arbitrary",),
        ),
    )(x, src_mask, a1, g1, a2, g2, wqkv, bqkv, wo, bo, b1, b2, w1, w2t)


# ----------------------------- reference (pure JAX) --------------------------
def encoder_layer_ref(x, src_mask, params):
    (a1, g1, a2, g2, wq, bq, wk, bk, wv, bv, wo, bo, w1, b1, w2, b2) = params

    def norm(v, alpha, bias):
        mean = jnp.mean(v, axis=-1, keepdims=True)
        var = jnp.sum((v - mean) ** 2, axis=-1, keepdims=True) / (D - 1)
        return alpha * (v - mean) / (jnp.sqrt(var) + EPS) + bias

    x2 = norm(x, a1, g1)
    q = x2 @ wq + bq
    k = x2 @ wk + bk
    v = x2 @ wv + bv
    q = q.reshape(B, S, H, DK).transpose(0, 2, 1, 3)
    k = k.reshape(B, S, H, DK).transpose(0, 2, 1, 3)
    v = v.reshape(B, S, H, DK).transpose(0, 2, 1, 3)
    scores = jnp.einsum("bhqd,bhkd->bhqk", q, k) / math.sqrt(DK)
    m = src_mask[:, None, :, :]                      # (B,1,1,S)
    scores = jnp.where(m == 0.0, NEG, scores)
    scores = jax.nn.softmax(scores, axis=-1)
    attn = jnp.einsum("bhqk,bhkd->bhqd", scores, v)
    attn = attn.transpose(0, 2, 1, 3).reshape(B, S, D)
    x = x + (attn @ wo + bo)
    x2 = norm(x, a2, g2)
    ff = jnp.maximum(x2 @ w1 + b1, 0.0) @ w2 + b2
    return x + ff


# ----------------------------- main -------------------------------------------
if __name__ == "__main__":
    key = jax.random.PRNGKey(0)
    keys = jax.random.split(key, 8)

    x = jax.random.normal(keys[0], (B, S, D), dtype=jnp.float32)
    # padding mask: batch 0 keeps all 8 tokens, batch 1 keeps first 5
    lengths = jnp.array([8, 5])
    pos = jnp.arange(S)[None, None, :]
    src_mask = (pos < lengths[:, None, None]).astype(jnp.float32)   # (B, 1, S)

    def linear_init(k, fan_in, fan_out):
        kw, kb = jax.random.split(k)
        bound = 1.0 / math.sqrt(fan_in)
        w = jax.random.uniform(kw, (fan_in, fan_out), jnp.float32, -bound, bound)
        b = jax.random.uniform(kb, (1, fan_out), jnp.float32, -bound, bound)
        return w, b

    a1 = jnp.ones((1, D), jnp.float32); g1 = jnp.zeros((1, D), jnp.float32)
    a2 = jnp.ones((1, D), jnp.float32); g2 = jnp.zeros((1, D), jnp.float32)
    wq, bq = linear_init(keys[1], D, D)
    wk, bk = linear_init(keys[2], D, D)
    wv, bv = linear_init(keys[3], D, D)
    wo, bo = linear_init(keys[4], D, D)
    w1, b1 = linear_init(keys[5], D, DFF)
    w2, b2 = linear_init(keys[6], DFF, D)

    params = (a1, g1, a2, g2, wq, bq, wk, bk, wv, bv, wo, bo, w1, b1, w2, b2)
    fused = fuse_params(params)        # one-time preprocessing, not per call

    out = encoder_layer(x, src_mask, fused)
    out = jax.block_until_ready(out)

    ref = encoder_layer_ref(x, src_mask, params)
    assert out.shape == (B, S, D)
    assert jnp.allclose(out, ref, rtol=2e-4, atol=2e-4), "mismatch vs reference"

    print("KERNEL_OK")
</pallas_src>

<mosaic_0001>
module attributes {stable_mosaic.version = 11 : i64} {
  func.func @_encoder_kernel(%arg0: i32, %arg1: memref<2x8x32xf32, #tpu.memory_space<vmem>>, %arg2: memref<2x1x8xf32, #tpu.memory_space<vmem>>, %arg3: memref<1x32xf32, #tpu.memory_space<vmem>>, %arg4: memref<1x32xf32, #tpu.memory_space<vmem>>, %arg5: memref<1x32xf32, #tpu.memory_space<vmem>>, %arg6: memref<1x32xf32, #tpu.memory_space<vmem>>, %arg7: memref<32x96xf32, #tpu.memory_space<vmem>>, %arg8: memref<1x96xf32, #tpu.memory_space<vmem>>, %arg9: memref<32x32xf32, #tpu.memory_space<vmem>>, %arg10: memref<1x32xf32, #tpu.memory_space<vmem>>, %arg11: memref<1x2048xf32, #tpu.memory_space<vmem>>, %arg12: memref<1x32xf32, #tpu.memory_space<vmem>>, %arg13: memref<32x2048xf32, #tpu.memory_space<any>>, %arg14: memref<32x2048xf32, #tpu.memory_space<any>>, %arg15: memref<2x8x32xf32, #tpu.memory_space<vmem>>, %arg16: memref<32x2048xf32, #tpu.memory_space<vmem>>, %arg17: memref<32x2048xf32, #tpu.memory_space<vmem>>, %arg18: memref<2x!tpu.dma_semaphore, #tpu.memory_space<semaphore_mem>>) attributes {dimension_semantics = [#tpu.dimension_semantics<arbitrary>], iteration_bounds = array<i64: 1>, scalar_prefetch = 0 : i64, scratch_operands = 3 : i64, tpu.core_type = #tpu.core_type<tc>, window_params = [{pipeline_mode = #tpu.pipeline_mode<synchronous>, transform_indices = @transform_0, window_bounds = array<i64: 2, 8, 32>}, {pipeline_mode = #tpu.pipeline_mode<synchronous>, transform_indices = @transform_1, window_bounds = array<i64: 2, 1, 8>}, {pipeline_mode = #tpu.pipeline_mode<synchronous>, transform_indices = @transform_2, window_bounds = array<i64: 1, 32>}, {pipeline_mode = #tpu.pipeline_mode<synchronous>, transform_indices = @transform_3, window_bounds = array<i64: 1, 32>}, {pipeline_mode = #tpu.pipeline_mode<synchronous>, transform_indices = @transform_4, window_bounds = array<i64: 1, 32>}, {pipeline_mode = #tpu.pipeline_mode<synchronous>, transform_indices = @transform_5, window_bounds = array<i64: 1, 32>}, {pipeline_mode = #tpu.pipeline_mode<synchronous>, transform_indices = @transform_6, window_bounds = array<i64: 32, 96>}, {pipeline_mode = #tpu.pipeline_mode<synchronous>, transform_indices = @transform_7, window_bounds = array<i64: 1, 96>}, {pipeline_mode = #tpu.pipeline_mode<synchronous>, transform_indices = @transform_8, window_bounds = array<i64: 32, 32>}, {pipeline_mode = #tpu.pipeline_mode<synchronous>, transform_indices = @transform_9, window_bounds = array<i64: 1, 32>}, {pipeline_mode = #tpu.pipeline_mode<synchronous>, transform_indices = @transform_10, window_bounds = array<i64: 1, 2048>}, {pipeline_mode = #tpu.pipeline_mode<synchronous>, transform_indices = @transform_11, window_bounds = array<i64: 1, 32>}, {}, {}, {pipeline_mode = #tpu.pipeline_mode<synchronous>, transform_indices = @transform_14, window_bounds = array<i64: 2, 8, 32>}]} {
    %c0_i32 = arith.constant 0 : i32
    %0 = tpu.memref_slice %arg18[%c0_i32] : memref<2x!tpu.dma_semaphore, #tpu.memory_space<semaphore_mem>> -> memref<1x!tpu.dma_semaphore, #tpu.memory_space<semaphore_mem>>
    %1 = tpu.memref_squeeze %0 : memref<1x!tpu.dma_semaphore, #tpu.memory_space<semaphore_mem>> -> memref<!tpu.dma_semaphore, #tpu.memory_space<semaphore_mem>>
    tpu.enqueue_dma source(%arg13 : memref<32x2048xf32, #tpu.memory_space<any>>) target(%arg16 : memref<32x2048xf32, #tpu.memory_space<vmem>>) target_semaphore(%1 : memref<!tpu.dma_semaphore, #tpu.memory_space<semaphore_mem>>)
    %c1_i32 = arith.constant 1 : i32
    %2 = tpu.memref_slice %arg18[%c1_i32] : memref<2x!tpu.dma_semaphore, #tpu.memory_space<semaphore_mem>> -> memref<1x!tpu.dma_semaphore, #tpu.memory_space<semaphore_mem>>
    %3 = tpu.memref_squeeze %2 : memref<1x!tpu.dma_semaphore, #tpu.memory_space<semaphore_mem>> -> memref<!tpu.dma_semaphore, #tpu.memory_space<semaphore_mem>>
    tpu.enqueue_dma source(%arg14 : memref<32x2048xf32, #tpu.memory_space<any>>) target(%arg17 : memref<32x2048xf32, #tpu.memory_space<vmem>>) target_semaphore(%3 : memref<!tpu.dma_semaphore, #tpu.memory_space<semaphore_mem>>)
    %c0 = arith.constant 0 : index
    %c0_0 = arith.constant 0 : index
    %c0_1 = arith.constant 0 : index
    %4 = vector.load %arg1[%c0, %c0_0, %c0_1] : memref<2x8x32xf32, #tpu.memory_space<vmem>>, vector<2x8x32xf32>
    %5 = vector.shape_cast %4 : vector<2x8x32xf32> to vector<16x32xf32>
    %c0_2 = arith.constant 0 : index
    %c0_3 = arith.constant 0 : index
    %c0_4 = arith.constant 0 : index
    %6 = vector.load %arg2[%c0_2, %c0_3, %c0_4] : memref<2x1x8xf32, #tpu.memory_space<vmem>>, vector<2x1x8xf32>
    %c0_5 = arith.constant 0 : index
    %c0_6 = arith.constant 0 : index
    %7 = vector.load %arg3[%c0_5, %c0_6] : memref<1x32xf32, #tpu.memory_space<vmem>>, vector<1x32xf32>
    %c0_7 = arith.constant 0 : index
    %c0_8 = arith.constant 0 : index
    %8 = vector.load %arg4[%c0_7, %c0_8] : memref<1x32xf32, #tpu.memory_space<vmem>>, vector<1x32xf32>
    %c0_9 = arith.constant 0 : index
    %c0_10 = arith.constant 0 : index
    %9 = vector.load %arg5[%c0_9, %c0_10] : memref<1x32xf32, #tpu.memory_space<vmem>>, vector<1x32xf32>
    %c0_11 = arith.constant 0 : index
    %c0_12 = arith.constant 0 : index
    %10 = vector.load %arg6[%c0_11, %c0_12] : memref<1x32xf32, #tpu.memory_space<vmem>>, vector<1x32xf32>
    %c0_13 = arith.constant 0 : index
    %c0_14 = arith.constant 0 : index
    %11 = vector.load %arg8[%c0_13, %c0_14] : memref<1x96xf32, #tpu.memory_space<vmem>>, vector<1x96xf32>
    %c0_15 = arith.constant 0 : index
    %c0_16 = arith.constant 0 : index
    %12 = vector.load %arg10[%c0_15, %c0_16] : memref<1x32xf32, #tpu.memory_space<vmem>>, vector<1x32xf32>
    %c0_17 = arith.constant 0 : index
    %c0_18 = arith.constant 0 : index
    %13 = vector.load %arg11[%c0_17, %c0_18] : memref<1x2048xf32, #tpu.memory_space<vmem>>, vector<1x2048xf32>
    %c0_19 = arith.constant 0 : index
    %c0_20 = arith.constant 0 : index
    %14 = vector.load %arg12[%c0_19, %c0_20] : memref<1x32xf32, #tpu.memory_space<vmem>>, vector<1x32xf32>
    %cst = arith.constant dense<0.000000e+00> : vector<16xf32>
    %15 = vector.multi_reduction <add>, %5, %cst [1] : vector<16x32xf32> to vector<16xf32>
    %16 = vector.shape_cast %15 : vector<16xf32> to vector<16x1xf32>
    %cst_21 = arith.constant 3.200000e+01 : f32
    %17 = vector.broadcast %cst_21 : f32 to vector<16x1xf32>
    %18 = arith.divf %16, %17 : vector<16x1xf32>
    %19 = vector.broadcast %18 : vector<16x1xf32> to vector<16x32xf32>
    %20 = arith.subf %5, %19 : vector<16x32xf32>
    %21 = arith.mulf %20, %20 : vector<16x32xf32>
    %cst_22 = arith.constant dense<0.000000e+00> : vector<16xf32>
    %22 = vector.multi_reduction <add>, %21, %cst_22 [1] : vector<16x32xf32> to vector<16xf32>
    %23 = vector.shape_cast %22 : vector<16xf32> to vector<16x1xf32>
    %cst_23 = arith.constant 0.0322580636 : f32
    %24 = vector.broadcast %cst_23 : f32 to vector<16x1xf32>
    %25 = arith.mulf %23, %24 : vector<16x1xf32>
    %26 = math.sqrt %25 : vector<16x1xf32>
    %cst_24 = arith.constant 9.99999997E-7 : f32
    %27 = vector.broadcast %cst_24 : f32 to vector<16x1xf32>
    %28 = arith.addf %26, %27 : vector<16x1xf32>
    %29 = tpu.reciprocal %28 : vector<16x1xf32> -> vector<16x1xf32>
    %30 = vector.broadcast %18 : vector<16x1xf32> to vector<16x32xf32>
    %31 = arith.subf %5, %30 : vector<16x32xf32>
    %32 = vector.broadcast %7 : vector<1x32xf32> to vector<16x32xf32>
    %33 = arith.mulf %32, %31 : vector<16x32xf32>
    %34 = vector.broadcast %29 : vector<16x1xf32> to vector<16x32xf32>
    %35 = arith.mulf %33, %34 : vector<16x32xf32>
    %36 = vector.broadcast %8 : vector<1x32xf32> to vector<16x32xf32>
    %37 = arith.addf %35, %36 : vector<16x32xf32>
    %c0_25 = arith.constant 0 : index
    %c0_26 = arith.constant 0 : index
    %38 = vector.load %arg7[%c0_25, %c0_26] : memref<32x96xf32, #tpu.memory_space<vmem>>, vector<32x96xf32>
    %cst_27 = arith.constant dense<0.000000e+00> : vector<16x96xf32>
    %39 = tpu.matmul %37, %38, %cst_27 {dimension_numbers = #tpu.dot_dimension_numbers<[1], [0], [0], [1], [0, 0, 1, 1], [], []>} : vector<16x32xf32>, vector<32x96xf32>, vector<16x96xf32> -> vector<16x96xf32>
    %40 = vector.broadcast %11 : vector<1x96xf32> to vector<16x96xf32>
    %41 = arith.addf %39, %40 : vector<16x96xf32>
    %42 = vector.extract_strided_slice %41 {offsets = [0, 0], sizes = [16, 8], strides = [1, 1]} : vector<16x96xf32> to vector<16x8xf32>
    %43 = vector.shape_cast %42 : vector<16x8xf32> to vector<2x1x8x8xf32>
    %44 = vector.extract_strided_slice %41 {offsets = [0, 8], sizes = [16, 8], strides = [1, 1]} : vector<16x96xf32> to vector<16x8xf32>
    %45 = vector.shape_cast %44 : vector<16x8xf32> to vector<2x1x8x8xf32>
    %46 = vector.extract_strided_slice %41 {offsets = [0, 16], sizes = [16, 8], strides = [1, 1]} : vector<16x96xf32> to vector<16x8xf32>
    %47 = vector.shape_cast %46 : vector<16x8xf32> to vector<2x1x8x8xf32>
    %48 = vector.extract_strided_slice %41 {offsets = [0, 24], sizes = [16, 8], strides = [1, 1]} : vector<16x96xf32> to vector<16x8xf32>
    %49 = vector.shape_cast %48 : vector<16x8xf32> to vector<2x1x8x8xf32>
    %50 = tpu.concatenate %43, %45, %47, %49 in 1 : vector<2x1x8x8xf32>, vector<2x1x8x8xf32>, vector<2x1x8x8xf32>, vector<2x1x8x8xf32> -> vector<2x4x8x8xf32>
    %51 = vector.shape_cast %50 : vector<2x4x8x8xf32> to vector<8x8x8xf32>
    %52 = vector.extract_strided_slice %41 {offsets = [0, 32], sizes = [16, 8], strides = [1, 1]} : vector<16x96xf32> to vector<16x8xf32>
    %53 = vector.shape_cast %52 : vector<16x8xf32> to vector<2x1x8x8xf32>
    %54 = vector.extract_strided_slice %41 {offsets = [0, 40], sizes = [16, 8], strides = [1, 1]} : vector<16x96xf32> to vector<16x8xf32>
    %55 = vector.shape_cast %54 : vector<16x8xf32> to vector<2x1x8x8xf32>
    %56 = vector.extract_strided_slice %41 {offsets = [0, 48], sizes = [16, 8], strides = [1, 1]} : vector<16x96xf32> to vector<16x8xf32>
    %57 = vector.shape_cast %56 : vector<16x8xf32> to vector<2x1x8x8xf32>
    %58 = vector.extract_strided_slice %41 {offsets = [0, 56], sizes = [16, 8], strides = [1, 1]} : vector<16x96xf32> to vector<16x8xf32>
    %59 = vector.shape_cast %58 : vector<16x8xf32> to vector<2x1x8x8xf32>
    %60 = tpu.concatenate %53, %55, %57, %59 in 1 : vector<2x1x8x8xf32>, vector<2x1x8x8xf32>, vector<2x1x8x8xf32>, vector<2x1x8x8xf32> -> vector<2x4x8x8xf32>
    %61 = vector.shape_cast %60 : vector<2x4x8x8xf32> to vector<8x8x8xf32>
    %62 = vector.extract_strided_slice %41 {offsets = [0, 64], sizes = [16, 8], strides = [1, 1]} : vector<16x96xf32> to vector<16x8xf32>
    %63 = vector.shape_cast %62 : vector<16x8xf32> to vector<2x1x8x8xf32>
    %64 = vector.extract_strided_slice %41 {offsets = [0, 72], sizes = [16, 8], strides = [1, 1]} : vector<16x96xf32> to vector<16x8xf32>
    %65 = vector.shape_cast %64 : vector<16x8xf32> to vector<2x1x8x8xf32>
    %66 = vector.extract_strided_slice %41 {offsets = [0, 80], sizes = [16, 8], strides = [1, 1]} : vector<16x96xf32> to vector<16x8xf32>
    %67 = vector.shape_cast %66 : vector<16x8xf32> to vector<2x1x8x8xf32>
    %68 = vector.extract_strided_slice %41 {offsets = [0, 88], sizes = [16, 8], strides = [1, 1]} : vector<16x96xf32> to vector<16x8xf32>
    %69 = vector.shape_cast %68 : vector<16x8xf32> to vector<2x1x8x8xf32>
    %70 = tpu.concatenate %63, %65, %67, %69 in 1 : vector<2x1x8x8xf32>, vector<2x1x8x8xf32>, vector<2x1x8x8xf32>, vector<2x1x8x8xf32> -> vector<2x4x8x8xf32>
    %71 = vector.shape_cast %70 : vector<2x4x8x8xf32> to vector<8x8x8xf32>
    "tpu.trace_start"() <{level = 10 : i32, message = "bqd,bkd->bqk"}> : () -> ()
    %cst_28 = arith.constant dense<0.000000e+00> : vector<8x8x8xf32>
    %72 = tpu.matmul %51, %61, %cst_28 {dimension_numbers = #tpu.dot_dimension_numbers<[2], [2], [1], [1], [0, 0, 0, 1, 1, 1], [0], [0]>} : vector<8x8x8xf32>, vector<8x8x8xf32>, vector<8x8x8xf32> -> vector<8x8x8xf32>
    "tpu.trace_stop"() : () -> ()
    %cst_29 = arith.constant 0.353553385 : f32
    %73 = vector.broadcast %cst_29 : f32 to vector<8x8x8xf32>
    %74 = arith.mulf %72, %73 : vector<8x8x8xf32>
    %75 = vector.shape_cast %74 : vector<8x8x8xf32> to vector<2x4x8x8xf32>
    %76 = vector.shape_cast %6 : vector<2x1x8xf32> to vector<2x1x1x8xf32>
    %cst_30 = arith.constant 0.000000e+00 : f32
    %77 = vector.broadcast %cst_30 : f32 to vector<2x1x1x8xf32>
    %78 = arith.cmpf oeq, %76, %77 : vector<2x1x1x8xf32>
    %cst_31 = arith.constant -1.000000e+09 : f32
    %79 = vector.shape_cast %78 : vector<2x1x1x8xi1> to vector<2x1x1x8xi1>
    %80 = vector.broadcast %79 : vector<2x1x1x8xi1> to vector<2x4x8x8xi1>
    %81 = vector.broadcast %cst_31 : f32 to vector<2x4x8x8xf32>
    %82 = arith.select %80, %81, %75 : vector<2x4x8x8xi1>, vector<2x4x8x8xf32>
    %83 = vector.shape_cast %82 : vector<2x4x8x8xf32> to vector<8x8x8xf32>
    %cst_32 = arith.constant dense<0xFF800000> : vector<8x8xf32>
    %84 = vector.multi_reduction <maximumf>, %83, %cst_32 [2] : vector<8x8x8xf32> to vector<8x8xf32>
    %85 = vector.shape_cast %84 : vector<8x8xf32> to vector<8x8x1xf32>
    %86 = vector.broadcast %85 : vector<8x8x1xf32> to vector<8x8x8xf32>
    %87 = arith.subf %83, %86 : vector<8x8x8xf32>
    %88 = math.exp %87 : vector<8x8x8xf32>
    %cst_33 = arith.constant dense<0.000000e+00> : vector<8x8xf32>
    %89 = vector.multi_reduction <add>, %88, %cst_33 [2] : vector<8x8x8xf32> to vector<8x8xf32>
    %90 = vector.shape_cast %89 : vector<8x8xf32> to vector<8x8x1xf32>
    %91 = tpu.reciprocal %90 : vector<8x8x1xf32> -> vector<8x8x1xf32>
    %92 = vector.broadcast %91 : vector<8x8x1xf32> to vector<8x8x8xf32>
    %93 = arith.mulf %88, %92 : vector<8x8x8xf32>
    "tpu.trace_start"() <{level = 10 : i32, message = "bqk,bkd->bqd"}> : () -> ()
    %cst_34 = arith.constant dense<0.000000e+00> : vector<8x8x8xf32>
    %94 = tpu.matmul %93, %71, %cst_34 {dimension_numbers = #tpu.dot_dimension_numbers<[2], [1], [1], [2], [0, 0, 0, 1, 1, 2], [0], [0]>} : vector<8x8x8xf32>, vector<8x8x8xf32>, vector<8x8x8xf32> -> vector<8x8x8xf32>
    "tpu.trace_stop"() : () -> ()
    %95 = vector.shape_cast %94 : vector<8x8x8xf32> to vector<2x4x8x8xf32>
    %96 = vector.extract_strided_slice %95 {offsets = [0, 0, 0, 0], sizes = [2, 1, 8, 8], strides = [1, 1, 1, 1]} : vector<2x4x8x8xf32> to vector<2x1x8x8xf32>
    %97 = vector.shape_cast %96 : vector<2x1x8x8xf32> to vector<2x8x8xf32>
    %98 = vector.extract_strided_slice %95 {offsets = [0, 1, 0, 0], sizes = [2, 1, 8, 8], strides = [1, 1, 1, 1]} : vector<2x4x8x8xf32> to vector<2x1x8x8xf32>
    %99 = vector.shape_cast %98 : vector<2x1x8x8xf32> to vector<2x8x8xf32>
    %100 = vector.extract_strided_slice %95 {offsets = [0, 2, 0, 0], sizes = [2, 1, 8, 8], strides = [1, 1, 1, 1]} : vector<2x4x8x8xf32> to vector<2x1x8x8xf32>
    %101 = vector.shape_cast %100 : vector<2x1x8x8xf32> to vector<2x8x8xf32>
    %102 = vector.extract_strided_slice %95 {offsets = [0, 3, 0, 0], sizes = [2, 1, 8, 8], strides = [1, 1, 1, 1]} : vector<2x4x8x8xf32> to vector<2x1x8x8xf32>
    %103 = vector.shape_cast %102 : vector<2x1x8x8xf32> to vector<2x8x8xf32>
    %104 = tpu.concatenate %97, %99, %101, %103 in 2 : vector<2x8x8xf32>, vector<2x8x8xf32>, vector<2x8x8xf32>, vector<2x8x8xf32> -> vector<2x8x32xf32>
    %105 = vector.shape_cast %104 : vector<2x8x32xf32> to vector<16x32xf32>
    %c0_35 = arith.constant 0 : index
    %c0_36 = arith.constant 0 : index
    %106 = vector.load %arg9[%c0_35, %c0_36] : memref<32x32xf32, #tpu.memory_space<vmem>>, vector<32x32xf32>
    %cst_37 = arith.constant dense<0.000000e+00> : vector<16x32xf32>
    %107 = tpu.matmul %105, %106, %cst_37 {dimension_numbers = #tpu.dot_dimension_numbers<[1], [0], [0], [1], [0, 0, 1, 1], [], []>} : vector<16x32xf32>, vector<32x32xf32>, vector<16x32xf32> -> vector<16x32xf32>
    %108 = vector.broadcast %12 : vector<1x32xf32> to vector<16x32xf32>
    %109 = arith.addf %107, %108 : vector<16x32xf32>
    %110 = arith.addf %5, %109 : vector<16x32xf32>
    %cst_38 = arith.constant dense<0.000000e+00> : vector<16xf32>
    %111 = vector.multi_reduction <add>, %110, %cst_38 [1] : vector<16x32xf32> to vector<16xf32>
    %112 = vector.shape_cast %111 : vector<16xf32> to vector<16x1xf32>
    %cst_39 = arith.constant 3.200000e+01 : f32
    %113 = vector.broadcast %cst_39 : f32 to vector<16x1xf32>
    %114 = arith.divf %112, %113 : vector<16x1xf32>
    %115 = vector.broadcast %114 : vector<16x1xf32> to vector<16x32xf32>
    %116 = arith.subf %110, %115 : vector<16x32xf32>
    %117 = arith.mulf %116, %116 : vector<16x32xf32>
    %cst_40 = arith.constant dense<0.000000e+00> : vector<16xf32>
    %118 = vector.multi_reduction <add>, %117, %cst_40 [1] : vector<16x32xf32> to vector<16xf32>
    %119 = vector.shape_cast %118 : vector<16xf32> to vector<16x1xf32>
    %cst_41 = arith.constant 0.0322580636 : f32
    %120 = vector.broadcast %cst_41 : f32 to vector<16x1xf32>
    %121 = arith.mulf %119, %120 : vector<16x1xf32>
    %122 = math.sqrt %121 : vector<16x1xf32>
    %cst_42 = arith.constant 9.99999997E-7 : f32
    %123 = vector.broadcast %cst_42 : f32 to vector<16x1xf32>
    %124 = arith.addf %122, %123 : vector<16x1xf32>
    %125 = tpu.reciprocal %124 : vector<16x1xf32> -> vector<16x1xf32>
    %126 = vector.broadcast %114 : vector<16x1xf32> to vector<16x32xf32>
    %127 = arith.subf %110, %126 : vector<16x32xf32>
    %128 = vector.broadcast %9 : vector<1x32xf32> to vector<16x32xf32>
    %129 = arith.mulf %128, %127 : vector<16x32xf32>
    %130 = vector.broadcast %125 : vector<16x1xf32> to vector<16x32xf32>
    %131 = arith.mulf %129, %130 : vector<16x32xf32>
    %132 = vector.broadcast %10 : vector<1x32xf32> to vector<16x32xf32>
    %133 = arith.addf %131, %132 : vector<16x32xf32>
    %c0_i32_43 = arith.constant 0 : i32
    %134 = tpu.memref_slice %arg18[%c0_i32_43] : memref<2x!tpu.dma_semaphore, #tpu.memory_space<semaphore_mem>> -> memref<1x!tpu.dma_semaphore, #tpu.memory_space<semaphore_mem>>
    %135 = tpu.memref_squeeze %134 : memref<1x!tpu.dma_semaphore, #tpu.memory_space<semaphore_mem>> -> memref<!tpu.dma_semaphore, #tpu.memory_space<semaphore_mem>>
    tpu.wait_dma2 semaphore(%135 : memref<!tpu.dma_semaphore, #tpu.memory_space<semaphore_mem>>) src(%arg13 : memref<32x2048xf32, #tpu.memory_space<any>>) dst(%arg16 : memref<32x2048xf32, #tpu.memory_space<vmem>>)
    %c0_44 = arith.constant 0 : index
    %c0_45 = arith.constant 0 : index
    %136 = vector.load %arg16[%c0_44, %c0_45] : memref<32x2048xf32, #tpu.memory_space<vmem>>, vector<32x2048xf32>
    %cst_46 = arith.constant dense<0.000000e+00> : vector<16x2048xf32>
    %137 = tpu.matmul %133, %136, %cst_46 {dimension_numbers = #tpu.dot_dimension_numbers<[1], [0], [0], [1], [0, 0, 1, 1], [], []>} : vector<16x32xf32>, vector<32x2048xf32>, vector<16x2048xf32> -> vector<16x2048xf32>
    %138 = vector.broadcast %13 : vector<1x2048xf32> to vector<16x2048xf32>
    %139 = arith.addf %137, %138 : vector<16x2048xf32>
    %cst_47 = arith.constant 0.000000e+00 : f32
    %140 = vector.broadcast %cst_47 : f32 to vector<16x2048xf32>
    %141 = arith.maximumf %139, %140 : vector<16x2048xf32>
    %c1_i32_48 = arith.constant 1 : i32
    %142 = tpu.memref_slice %arg18[%c1_i32_48] : memref<2x!tpu.dma_semaphore, #tpu.memory_space<semaphore_mem>> -> memref<1x!tpu.dma_semaphore, #tpu.memory_space<semaphore_mem>>
    %143 = tpu.memref_squeeze %142 : memref<1x!tpu.dma_semaphore, #tpu.memory_space<semaphore_mem>> -> memref<!tpu.dma_semaphore, #tpu.memory_space<semaphore_mem>>
    tpu.wait_dma2 semaphore(%143 : memref<!tpu.dma_semaphore, #tpu.memory_space<semaphore_mem>>) src(%arg14 : memref<32x2048xf32, #tpu.memory_space<any>>) dst(%arg17 : memref<32x2048xf32, #tpu.memory_space<vmem>>)
    %c0_49 = arith.constant 0 : index
    %c0_50 = arith.constant 0 : index
    %144 = vector.load %arg17[%c0_49, %c0_50] : memref<32x2048xf32, #tpu.memory_space<vmem>>, vector<32x2048xf32>
    %cst_51 = arith.constant dense<0.000000e+00> : vector<16x32xf32>
    %145 = tpu.matmul %141, %144, %cst_51 {dimension_numbers = #tpu.dot_dimension_numbers<[1], [1], [0], [0], [0, 0, 1, 0], [], []>} : vector<16x2048xf32>, vector<32x2048xf32>, vector<16x32xf32> -> vector<16x32xf32>
    %146 = vector.broadcast %14 : vector<1x32xf32> to vector<16x32xf32>
    %147 = arith.addf %145, %146 : vector<16x32xf32>
    %148 = arith.addf %110, %147 : vector<16x32xf32>
    %149 = vector.shape_cast %148 : vector<16x32xf32> to vector<2x8x32xf32>
    %c0_52 = arith.constant 0 : index
    %c0_53 = arith.constant 0 : index
    %c0_54 = arith.constant 0 : index
    %150 = vector.load %arg15[%c0_52, %c0_53, %c0_54] : memref<2x8x32xf32, #tpu.memory_space<vmem>>, vector<2x8x32xf32>
    tpu.vector_store %arg15[%c0_52, %c0_53, %c0_54], %149 {strides = array<i32>} : memref<2x8x32xf32, #tpu.memory_space<vmem>>, vector<2x8x32xf32>,
    return
  }
  func.func @transform_0(%arg0: i32) -> (i32, i32, i32) {
    %c0_i32 = arith.constant 0 : i32
    %c0_i32_0 = arith.constant 0 : i32
    %c0_i32_1 = arith.constant 0 : i32
    %c0_i32_2 = arith.constant 0 : i32
    return %c0_i32, %c0_i32_0, %c0_i32_1 : i32, i32, i32
  }
  func.func @transform_1(%arg0: i32) -> (i32, i32, i32) {
    %c0_i32 = arith.constant 0 : i32
    %c0_i32_0 = arith.constant 0 : i32
    %c0_i32_1 = arith.constant 0 : i32
    %c0_i32_2 = arith.constant 0 : i32
    return %c0_i32, %c0_i32_0, %c0_i32_1 : i32, i32, i32
  }
  func.func @transform_2(%arg0: i32) -> (i32, i32) {
    %c0_i32 = arith.constant 0 : i32
    %c0_i32_0 = arith.constant 0 : i32
    %c0_i32_1 = arith.constant 0 : i32
    return %c0_i32, %c0_i32_0 : i32, i32
  }
  func.func @transform_3(%arg0: i32) -> (i32, i32) {
    %c0_i32 = arith.constant 0 : i32
    %c0_i32_0 = arith.constant 0 : i32
    %c0_i32_1 = arith.constant 0 : i32
    return %c0_i32, %c0_i32_0 : i32, i32
  }
  func.func @transform_4(%arg0: i32) -> (i32, i32) {
    %c0_i32 = arith.constant 0 : i32
    %c0_i32_0 = arith.constant 0 : i32
    %c0_i32_1 = arith.constant 0 : i32
    return %c0_i32, %c0_i32_0 : i32, i32
  }
  func.func @transform_5(%arg0: i32) -> (i32, i32) {
    %c0_i32 = arith.constant 0 : i32
    %c0_i32_0 = arith.constant 0 : i32
    %c0_i32_1 = arith.constant 0 : i32
    return %c0_i32, %c0_i32_0 : i32, i32
  }
  func.func @transform_6(%arg0: i32) -> (i32, i32) {
    %c0_i32 = arith.constant 0 : i32
    %c0_i32_0 = arith.constant 0 : i32
    %c0_i32_1 = arith.constant 0 : i32
    return %c0_i32, %c0_i32_0 : i32, i32
  }
  func.func @transform_7(%arg0: i32) -> (i32, i32) {
    %c0_i32 = arith.constant 0 : i32
    %c0_i32_0 = arith.constant 0 : i32
    %c0_i32_1 = arith.constant 0 : i32
    return %c0_i32, %c0_i32_0 : i32, i32
  }
  func.func @transform_8(%arg0: i32) -> (i32, i32) {
    %c0_i32 = arith.constant 0 : i32
    %c0_i32_0 = arith.constant 0 : i32
    %c0_i32_1 = arith.constant 0 : i32
    return %c0_i32, %c0_i32_0 : i32, i32
  }
  func.func @transform_9(%arg0: i32) -> (i32, i32) {
    %c0_i32 = arith.constant 0 : i32
    %c0_i32_0 = arith.constant 0 : i32
    %c0_i32_1 = arith.constant 0 : i32
    return %c0_i32, %c0_i32_0 : i32, i32
  }
  func.func @transform_10(%arg0: i32) -> (i32, i32) {
    %c0_i32 = arith.constant 0 : i32
    %c0_i32_0 = arith.constant 0 : i32
    %c0_i32_1 = arith.constant 0 : i32
    return %c0_i32, %c0_i32_0 : i32, i32
  }
  func.func @transform_11(%arg0: i32) -> (i32, i32) {
    %c0_i32 = arith.constant 0 : i32
    %c0_i32_0 = arith.constant 0 : i32
    %c0_i32_1 = arith.constant 0 : i32
    return %c0_i32, %c0_i32_0 : i32, i32
  }
  func.func @transform_14(%arg0: i32) -> (i32, i32, i32) {
    %c0_i32 = arith.constant 0 : i32
    %c0_i32_0 = arith.constant 0 : i32
    %c0_i32_1 = arith.constant 0 : i32
    %c0_i32_2 = arith.constant 0 : i32
    return %c0_i32, %c0_i32_0, %c0_i32_1 : i32, i32, i32
  }
}

</mosaic_0001>

<bundles_post_ra>
// kernel: tpu_custom_call.1
= control target key start
LH: loop header
LB: loop body
LE: loop exit
PB: predicated region body
PF: predicated region fallthrough
CT: control target
= control target key end

     0   :  { %19 = vsyncpa [#allocation6], 0  ;;  %s4548_s0 = inlined_call_operand.hbm [shape: f32[2,8,32], index: 0, kind: input, shape index: {}]   ;;  %s4549_s1 = inlined_call_operand.hbm [shape: f32[2,1,8], index: 1, kind: input, shape index: {}]   ;;  %s4550_s2 = inlined_call_operand.vmem [shape: f32[1,32], index: 2, kind: input, shape index: {}]   ;;  %s4551_s3 = inlined_call_operand.vmem [shape: f32[1,32], index: 3, kind: input, shape index: {}]   ;;  %s4552_s4 = inlined_call_operand.hbm [shape: f32[1,32], index: 4, kind: input, shape index: {}]   ;;  %s4553_s5 = inlined_call_operand.hbm [shape: f32[1,32], index: 5, kind: input, shape index: {}]   ;;  %s4554_s6 = inlined_call_operand.hbm [shape: f32[32,96], index: 6, kind: input, shape index: {}]   ;;  %s4555_s7 = inlined_call_operand.hbm [shape: f32[1,96], index: 7, kind: input, shape index: {}]   ;;  %s4556_s8 = inlined_call_operand.hbm [shape: f32[32,32], index: 8, kind: input, shape index: {}]   ;;  %s4557_s9 = inlined_call_operand.hbm [shape: f32[1,32], index: 9, kind: input, shape index: {}]   ;;  %s4558_s10 = inlined_call_operand.vmem [shape: f32[1,2048], index: 10, kind: input, shape index: {}]   ;;  %s4559_s11 = inlined_call_operand.vmem [shape: f32[1,32], index: 11, kind: input, shape index: {}]   ;;  %s4560_s12 = inlined_call_operand.hbm [shape: f32[32,2048], index: 12, kind: input, shape index: {}]   ;;  %s4561_s13 = inlined_call_operand.hbm [shape: f32[32,2048], index: 13, kind: input, shape index: {}]   ;;  %s4562_s14 = inlined_call_operand.hbm [shape: f32[2,8,32], index: 14, kind: output, shape index: {}]  }
   0x1   :  { %20 = vsyncpa [#allocation9], 0 }
   0x2   :  { %21 = vsyncpa [#allocation12], 0 }
   0x3   :  { %22 = vsyncpa [#allocation15], 0 }
   0x4   :  { %23 = vsyncpa [#allocation18], 0 }
   0x5   :  { %24 = vsyncpa [#allocation7], 0  ;;  %s3881_s29 = smov [#allocation8]  }
   0x6   :  { %s42_s30 = sshll.u32 %s3881_s29, 4  ;;  %s43_s30 = int_to_ptr.vmem [resolvable:$true] %s42_s30 }
   0x7   :  { %s3653_s15 = scalar_lea.vmem %s43_s30, 32  ;;  %p3658_p1 = scmp.lt.s32.totalorder %s43_s30, %s43_s30 }
   0x8   :  { %p3654_p0 = scmp.ne.s32.totalorder %s43_s30, %s3653_s15  ;;  %p3659_p2 = scmp.lt.s32.totalorder %s3653_s15, %s3653_s15 }
   0xa   :  { %p3660_p3 = por %p3659_p2, %p3658_p1 }
   0xc   :  { %p3661_p4 = pnand %p3660_p3, %p3654_p0 }
   0xe   :  { %3664 = shalt.err (!%p3661_p4)
}
   0xf   :  { %s3882_s16 = smov 16   ;;  %s3883_s17 = smov 1  }
  0x10   :  { %48 = dma.hbm_to_vmem [thread:$0]  %s4549_s1, 32, %s43_s30, [#allocation9], %s3882_s16, %s3882_s16, %s3883_s17  }
  0x11   :  { %s3884_s20 = smov [#allocation11]   ;;  %s3885_s22 = smov [#allocation14]  }
  0x12   :  { %s69_s21 = sshll.u32 %s3884_s20, 4  ;;  %s91_s23 = sshll.u32 %s3885_s22, 4  ;;  %s70_s21 = int_to_ptr.vmem [resolvable:$true] %s69_s21  ;;  %s92_s23 = int_to_ptr.vmem [resolvable:$true] %s91_s23 }
  0x13   :  { %s3673_s24 = scalar_lea.vmem %s70_s21, 16  ;;  %s3677_s25 = scalar_lea.vmem %s70_s21, 32 }
  0x14   :  { %p3674_p5 = scmp.ne.s32.totalorder %s70_s21, %s3673_s24  ;;  %p3678_p6 = scmp.lt.s32.totalorder %s70_s21, %s70_s21 }
  0x15   :  { %p3679_p7 = scmp.lt.s32.totalorder %s3677_s25, %s3673_s24 }
  0x17   :  { %p3680_p8 = por %p3679_p7, %p3678_p6 }
  0x19   :  { %p3681_p9 = pnand %p3680_p8, %p3674_p5 }
  0x1b   :  { %3684 = shalt.err (!%p3681_p9)
}
  0x1c   :  { %72 = dma.hbm_to_vmem [thread:$0]  %s4553_s5, 16, %s70_s21, [#allocation12]  }
  0x1d   :  { %s3693_s28 = scalar_lea.vmem %s92_s23, 16  ;;  %s3697_s1 = scalar_lea.vmem %s92_s23, 32 }
  0x1e   :  { %p3694_p10 = scmp.ne.s32.totalorder %s92_s23, %s3693_s28  ;;  %p3698_p11 = scmp.lt.s32.totalorder %s92_s23, %s92_s23 }
  0x1f   :  { %p3699_p12 = scmp.lt.s32.totalorder %s3697_s1, %s3693_s28 }
  0x21   :  { %p3700_p13 = por %p3699_p12, %p3698_p11 }
  0x23   :  { %p3701_p0 = pnand %p3700_p13, %p3694_p10 }
  0x25   :  { %3704 = shalt.err (!%p3701_p0)
}
  0x26   :  { %94 = dma.hbm_to_vmem [thread:$0]  %s4555_s7, 16, %s92_s23, [#allocation15]  }
  0x27   :  { %s3886_s15 = smov [#allocation5]  }
  0x28   :  { %s30_s17 = sshll.u32 %s3886_s15, 4  ;;  %s31_s17 = int_to_ptr.vmem [resolvable:$true] %s30_s17 }
  0x29   :  { %s3713_s18 = scalar_lea.vmem %s31_s17, 256  ;;  %p3718_p2 = scmp.lt.s32.totalorder %s31_s17, %s31_s17 }
  0x2a   :  { %p3714_p1 = scmp.ne.s32.totalorder %s31_s17, %s3713_s18  ;;  %p3719_p3 = scmp.lt.s32.totalorder %s3713_s18, %s3713_s18 }
  0x2c   :  { %p3720_p4 = por %p3719_p3, %p3718_p2 }
  0x2e   :  { %p3721_p5 = pnand %p3720_p4, %p3714_p1 }
  0x30   :  { %3724 = shalt.err (!%p3721_p5)
}
  0x31   :  { %s3887_s5 = smov 128   ;;  %s3888_s19 = smov 8  }
  0x32   :  { %36 = dma.hbm_to_vmem [thread:$0]  %s4548_s0, 256, %s31_s17, [#allocation6], %s3887_s5, %s3887_s5, %s3888_s19  }
  0x33   :  { %s3889_s7 = smov [#allocation10]   ;;  %s3890_s23 = smov [#allocation13]  }
  0x34   :  { %s59_s22 = sshll.u32 %s3889_s7, 4  ;;  %s78_s24 = sshll.u32 %s3890_s23, 4  ;;  %s60_s22 = int_to_ptr.vmem [resolvable:$true] %s59_s22  ;;  %s79_s24 = int_to_ptr.vmem [resolvable:$true] %s78_s24 }
  0x35   :  { %s3733_s25 = scalar_lea.vmem %s60_s22, 16  ;;  %s3737_s26 = scalar_lea.vmem %s60_s22, 32 }
  0x36   :  { %p3734_p6 = scmp.ne.s32.totalorder %s60_s22, %s3733_s25  ;;  %p3738_p7 = scmp.lt.s32.totalorder %s60_s22, %s60_s22 }
  0x37   :  { %p3739_p8 = scmp.lt.s32.totalorder %s3737_s26, %s3733_s25 }
  0x39   :  { %p3740_p9 = por %p3739_p8, %p3738_p7 }
  0x3b   :  { %p3741_p10 = pnand %p3740_p9, %p3734_p6 }
  0x3d   :  { %3744 = shalt.err (!%p3741_p10)
}
  0x3e   :  { %62 = dma.hbm_to_vmem [thread:$0]  %s4552_s4, 16, %s60_s22, [#allocation9]  }
  0x3f   :  { %s3753_s1 = scalar_lea.vmem %s79_s24, 512  ;;  %p3758_p12 = scmp.lt.s32.totalorder %s79_s24, %s79_s24 }
  0x40   :  { %p3754_p11 = scmp.ne.s32.totalorder %s79_s24, %s3753_s1  ;;  %p3759_p13 = scmp.lt.s32.totalorder %s3753_s1, %s3753_s1 }
  0x42   :  { %p3760_p0 = por %p3759_p13, %p3758_p12 }
  0x44   :  { %p3761_p1 = pnand %p3760_p0, %p3754_p11 }
  0x46   :  { %3764 = shalt.err (!%p3761_p1)
}
  0x47   :  { %84 = dma.hbm_to_vmem [thread:$0]  %s4554_s6, 512, %s79_s24, [#allocation12], %s3887_s5, %s3887_s5, %s3888_s19  }
  0x48   :  { %s3891_s30 = smov [#allocation16]   ;;  %s3892_s17 = smov [#allocation17]  }
  0x49   :  { %s100_s15 = sshll.u32 %s3891_s30, 4  ;;  %s113_s18 = sshll.u32 %s3892_s17, 4  ;;  %s101_s15 = int_to_ptr.vmem [resolvable:$true] %s100_s15  ;;  %s114_s18 = int_to_ptr.vmem [resolvable:$true] %s113_s18 }
  0x4a   :  { %s3773_s4 = scalar_lea.vmem %s101_s15, 512  ;;  %p3778_p3 = scmp.lt.s32.totalorder %s101_s15, %s101_s15 }
  0x4b   :  { %p3774_p2 = scmp.ne.s32.totalorder %s101_s15, %s3773_s4  ;;  %p3779_p4 = scmp.lt.s32.totalorder %s3773_s4, %s3773_s4 }
  0x4d   :  { %p3780_p5 = por %p3779_p4, %p3778_p3 }
  0x4f   :  { %p3781_p6 = pnand %p3780_p5, %p3774_p2 }
  0x51   :  { %3784 = shalt.err (!%p3781_p6)
}
  0x52   :  { %106 = dma.hbm_to_vmem [thread:$0]  %s4556_s8, 512, %s101_s15, [#allocation15], %s3887_s5, %s3887_s5, %s3888_s19  }
  0x53   :  { %s3793_s6 = scalar_lea.vmem %s114_s18, 16  ;;  %s3797_s7 = scalar_lea.vmem %s114_s18, 32 }
  0x54   :  { %p3794_p7 = scmp.ne.s32.totalorder %s114_s18, %s3793_s6  ;;  %p3798_p8 = scmp.lt.s32.totalorder %s114_s18, %s114_s18 }
  0x55   :  { %p3799_p9 = scmp.lt.s32.totalorder %s3797_s7, %s3793_s6 }
  0x57   :  { %p3800_p10 = por %p3799_p9, %p3798_p8 }
  0x59   :  { %p3801_p11 = pnand %p3800_p10, %p3794_p7 }
  0x5b   :  { %3804 = shalt.err (!%p3801_p11)
}
  0x5c   :  { %116 = dma.hbm_to_vmem [thread:$0]  %s4557_s9, 16, %s114_s18, [#allocation18]  }
  0x5d   :  { %3865 = dma.done.wait [#allocation6], 256  }
  0x5e   :  { %3866 = vsyncadd [#allocation6], 4294967040 }
  0x5f   :  { %3867 = dma.done.wait [#allocation9], 48  }
  0x60   :  { %3868 = vsyncadd [#allocation9], 4294967248 }
  0x61   :  { %3869 = dma.done.wait [#allocation12], 528  }
  0x62   :  { %3870 = vsyncadd [#allocation12], 4294966768 }
  0x63   :  { %3871 = dma.done.wait [#allocation15], 528  }
  0x64   :  { %3872 = vsyncadd [#allocation15], 4294966768 }
  0x65   :  { %3873 = dma.done.wait [#allocation18], 16  }
  0x66   :  { %3874 = vsyncadd [#allocation18], 4294967280  ;;  %vm181_vm0 = vcmask 261120   ;;  %v4018_v0 = vld [vmem:[%s4558_s10] sm:$0xff]  ;;  %v4023_v1 = vld [vmem:[%s4558_s10 + $0x8] sm:$0xff]  ;;  %v3893_v47 = vmov 0.0  }
  0x67   :  { %v4028_v2 = vld [vmem:[%s4559_s11] ss:$0 sm:$0xff]  ;;  %v4032_v4 = vld [vmem:[#allocation5 + $0x8] sm:$0xff]  ;;  %v239_v20 = vld [vmem:[#allocation13] sm:$0xff]  ;;  %3482 = vmatprep.subr.mxu1 %v3893_v47  ;;  %vm3894_vm5 = vmmov 0   ;;  %s3897_s0 = smov 104  }
  0x68   :  { %v4030_v3 = vld [vmem:[#allocation5] sm:$0xff]  ;;  %v185_v6 = vsel %vm181_vm0, %v4032_v4, 0.0  ;;  %v242_v17 = vld [vmem:[#allocation13 + $0x18] sm:$0xff]  ;;  %v3376_v49 = vld [vmem:[#allocation14] ss:$0 sm:$0xff]  ;;  %3484 = vmatprep.mubr.msk.f32.mxu1 %vm3894_vm5, %v3893_v47  ;;  %s3898_s29 = smov 96  }
  0x69   :  { %v182_v5 = vsel %vm181_vm0, %v4030_v3, 0.0  ;;  %v241_v18 = vld [vmem:[#allocation13 + $0x10] sm:$0xff]  ;;  %3471 = vmatprep.subr.mxu0 %v242_v17  ;;  %v240_v19 = vld [vmem:[#allocation13 + $0x8] sm:$0xff]  ;;  %vm346_vm6 = vcmask 64512   ;;  %s3900_s30 = smov 64   ;;  %s3901_s15 = smov 24  }
  0x6a   :  { %183 = vadd.xlane.f32.xlu0 %v182_v5  ;;  %3472 = vmatpush3.msra.mxu0 %v242_v17  ;;  %v3374_v37 = vld [vmem:[%s4550_s2] ss:$0 sm:$0xff]  ;;  %s3895_s2 = smov 112   ;;  %vm1705_vm11 = vcmask 130048   ;;  %vm1708_vm12 = vcmask 195584   ;;  %s3903_s18 = smov [#allocation3]  }
  0x6b   :  { %3473 = vmatprep.subr.mxu0 %v241_v18  ;;  %v3375_v40 = vld [vmem:[%s4551_s3] ss:$0 sm:$0xff]  ;;  %s3896_s3 = smov 120   ;;  %s164_s4 = sshll.u32 %s3903_s18, 4  ;;  %s165_s4 = int_to_ptr.vmem [resolvable:$true] %s164_s4 }
  0x6c   :  { %3474 = vmatpush3.msra.mxu0 %v241_v18 }
  0x6d   :  { %3475 = vmatprep.subr.mxu0 %v240_v19 }
  0x6e   :  { %186 = vadd.xlane.f32.xlu0 %v185_v6  ;;  %3476 = vmatpush3.msra.mxu0 %v240_v19 }
  0x6f   :  { %3477 = vmatprep.subr.mxu0 %v239_v20 }
  0x70   :  { %3478 = vmatpush3.msra.mxu0 %v239_v20 }
  0x71   :  { %3502 = vmatprep.subr.mxu0 %v3893_v47 }
  0xf3   :  { %v184_v7 = vpop.xlane.xlu0 %183 }
  0xf4   :  { %v189_v8 = vmul.f32 0.03125, %v184_v7 }
  0xf6   :  { %v191_v9 = vsub.f32 %v4030_v3, %v189_v8  ;;  %v965_v8 = vlaneseq }
  0xf7   :  { %v187_v10 = vpop.xlane.xlu0 %186 }
  0xf8   :  { %v190_v11 = vmul.f32 0.03125, %v187_v10  ;;  %v193_v12 = vmul.f32 %v191_v9, %v191_v9  ;;  %v227_v38 = vmul.f32 %v3374_v37, %v191_v9  ;;  %v170_v9 = vld [vmem:[#allocation8] sm:$0x1]  ;;  %v4134_v10 = vshrl.u32 %v965_v8, 7 }
  0xf9   :  { %vm961_vm7 = vcmp.eq.f32.partialorder %v170_v9, 0.0 }
  0xfa   :  { %v192_v13 = vsub.f32 %v4032_v4, %v190_v11  ;;  %v195_v14 = vsel %vm181_vm0, %v193_v12, 0.0  ;;  %v4137_v11 = vsub.s32 0, %v4134_v10  ;;  %v3899_v12 = vmov 0  }
  0xfb   :  { %196 = vadd.xlane.f32.xlu1 %v195_v14 }
  0xfc   :  { %v194_v15 = vmul.f32 %v192_v13, %v192_v13  ;;  %v228_v42 = vmul.f32 %v3374_v37, %v192_v13  ;;  %v963_v13 = vsel %vm961_vm7, 1, %v3899_v12 }
  0xfd   :  { %v968_v14 = vrot.slane %v963_v13, %v4137_v11 }
  0xfe   :  { %v198_v16 = vsel %vm181_vm0, %v194_v15, 0.0 }
  0xff   :  { %199 = vadd.xlane.f32.xlu1 %v198_v16  ;;  %vm4140_vm8 = vcmp.eq.s32.totalorder %v968_v14, 1 }
 0x184   :  { %v197_v21 = vpop.xlane.xlu1 %196 }
 0x185   :  { %v201_v22 = vmul.f32 0.032258064, %v197_v21  ;;  %v171_v21 = vld [vmem:[#allocation8 + $0x1] sm:$0x1] }
 0x186   :  { %vm962_vm9 = vcmp.eq.f32.partialorder %v171_v21, 0.0 }
 0x187   :  { %3597 = vrsqrt.f32 %v201_v22  ;;  %vm205_vm1 = vcmp.eq.f32.partialorder %v201_v22, inf  ;;  %v208_v27 = vand.u32 2147483648, %v201_v22  ;;  %vm207_vm2 = vcmp.eq.f32.partialorder %v201_v22, 0.0 }
 0x188   :  { %v200_v23 = vpop.xlane.xlu1 %199 }
 0x189   :  { %v202_v24 = vmul.f32 0.032258064, %v200_v23 }
 0x18b   :  { %3599 = vrsqrt.f32 %v202_v24  ;;  %vm212_vm3 = vcmp.eq.f32.partialorder %v202_v24, inf  ;;  %v215_v33 = vand.u32 2147483648, %v202_v24  ;;  %vm214_vm4 = vcmp.eq.f32.partialorder %v202_v24, 0.0 }
 0x194   :  { %v3598_v25 = vpop.eup %3597 }
 0x195   :  { %v204_v26 = vmul.f32 %v3598_v25, %v201_v22 }
 0x197   :  { %v206_v28 = vsel %vm205_vm1, %v201_v22, %v204_v26  ;;  %v964_v26 = vsel %vm962_vm9, 1, %v3899_v12 }
 0x198   :  { %v3600_v29 = vpop.eup %3599  ;;  %v209_v30 = vsel %vm207_vm2, %v208_v27, %v206_v28 }
 0x199   :  { %v211_v31 = vmul.f32 %v3600_v29, %v202_v24  ;;  %v217_v32 = vadd.f32 1e-06, %v209_v30 }
 0x19b   :  { %v213_v34 = vsel %vm212_vm3, %v202_v24, %v211_v31  ;;  %3601 = vrcp.f32 %v217_v32 }
 0x19c   :  { %v216_v35 = vsel %vm214_vm4, %v215_v33, %v213_v34  ;;  %v972_v33 = vrot.slane %v964_v26, %v4137_v11 }
 0x19d   :  { %v218_v36 = vadd.f32 1e-06, %v216_v35 }
 0x19e   :  { %vm4160_vm10 = vcmp.eq.s32.totalorder %v972_v33, 1 }
 0x19f   :  { %3603 = vrcp.f32 %v218_v36 }
 0x1a8   :  { %v3602_v39 = vpop.eup %3601 }
 0x1a9   :  { %v229_v41 = vmul.f32 %v3602_v39, %v227_v38 }
 0x1ab   :  { %v237_v43 = vadd.f32 %v3375_v40, %v229_v41 }
 0x1ac   :  { %v3604_v44 = vpop.eup %3603 }
 0x1ad   :  { %v230_v45 = vmul.f32 %v3604_v44, %v228_v42  ;;  %3479 = vmatprep.mubr.msk.f32.mxu0 %vm181_vm0, %v237_v43 }
 0x1af   :  { %v238_v46 = vadd.f32 %v3375_v40, %v230_v45 }
 0x1b1   :  { %3480 = vmatmul.mubr.msk.f32.vlgmr.msra.gmra.mxu0 %vm181_vm0, %v238_v46 }
 0x1b2   :  { %3504 = vmatprep.mubr.msk.f32.mxu0 %vm3894_vm5, %v3893_v47 }
 0x271   :  { %v3481_v48 = vpop.f32.mrf.mxu0 }
 0x272   :  { %v4060_v52 = vadd.f32 %v3481_v48, %v3376_v49 }
 0x273   :  { %v321_v50 = vpop.f32.mrf.mxu0 }
 0x274   :  { %v4056_v51 = vadd.f32 %v3376_v49, %v321_v50 }
 0x276   :  { %336 = vrot.lane.b32.xlu1 %v4056_v51, %s3895_s2  ;;  %332 = vrot.lane.b32.xlu0 %v4056_v51, %s3896_s3 }
 0x27a   :  { %340 = vrot.lane.b32.xlu1 %v4056_v51, %s3897_s0  ;;  %338 = vrot.lane.b32.xlu0 %v4060_v52, %s3895_s2 }
 0x27e   :  { %334 = vrot.lane.b32.xlu1 %v4060_v52, %s3896_s3  ;;  %344 = vrot.lane.b32.xlu0 %v4056_v51, %s3898_s29 }
 0x282   :  { %342 = vrot.lane.b32.xlu1 %v4060_v52, %s3897_s0 }
 0x2e8   :  { %v4067_v53 = vpop.permute.xlu1 %336  ;;  %v4069_v54 = vpop.permute.xlu0 %332 }
 0x2e9   :  { %497 = vrot.lane.b32.xlu0 %v4067_v53, %s3898_s29  ;;  %421 = vrot.lane.b32.xlu1 %v4069_v54, %s3898_s29 }
 0x2ec   :  { %v4073_v55 = vpop.permute.xlu1 %340  ;;  %v4075_v56 = vpop.permute.xlu0 %338 }
 0x2ed   :  { %649 = vrot.lane.b32.xlu0 %v4060_v52, %s3898_s29  ;;  %573 = vrot.lane.b32.xlu1 %v4073_v55, %s3898_s29 }
 0x2f0   :  { %v4079_v57 = vpop.permute.xlu1 %334  ;;  %v345_v58 = vpop.permute.xlu0 %344 }
 0x2f1   :  { %725 = vrot.lane.b32.xlu1 %v4079_v57, %s3898_s29  ;;  %801 = vrot.lane.b32.xlu0 %v4075_v56, %s3898_s29 }
 0x2f2   :  { %3483 = vmatpush3.xpose.msk.msra.mxu1 %vm346_vm6, %v345_v58 }
 0x2f3   :  { %3487 = vmatprep.subr.mxu1 %v3893_v47 }
 0x2f4   :  { %v4085_v59 = vpop.permute.xlu1 %342 }
 0x2f5   :  { %3485 = vmatmul.mubr.msk.f32.vlgmr.msra.gmra.mxu1 %vm346_vm6, %v4056_v51  ;;  %877 = vrot.lane.b32.xlu1 %v4085_v59, %s3898_s29 }
 0x2f6   :  { %3489 = vmatprep.mubr.msk.f32.mxu1 %vm3894_vm5, %v3893_v47 }
 0x35b   :  { %v422_v60 = vpop.permute.xlu1 %421  ;;  %v498_v61 = vpop.permute.xlu0 %497 }
 0x35c   :  { %3488 = vmatpush3.xpose.msk.msra.mxu1 %vm346_vm6, %v422_v60 }
 0x35d   :  { %3492 = vmatprep.subr.mxu1 %v3893_v47 }
 0x35f   :  { %v574_v62 = vpop.permute.xlu1 %573  ;;  %3490 = vmatmul.mubr.msk.f32.vlgmr.msra.gmra.mxu1 %vm346_vm6, %v4069_v54  ;;  %v650_v63 = vpop.permute.xlu0 %649 }
 0x360   :  { %3493 = vmatpush3.xpose.msk.msra.mxu1 %vm346_vm6, %v498_v61  ;;  %3503 = vmatpush3.xpose.msk.msra.mxu0 %vm346_vm6, %v650_v63 }
 0x361   :  { %3494 = vmatprep.mubr.msk.f32.mxu1 %vm3894_vm5, %v3893_v47  ;;  %3497 = vmatprep.subr.mxu1 %v3893_v47 }
 0x362   :  { %3512 = vmatprep.subr.mxu0 %v3893_v47 }
 0x363   :  { %3495 = vmatmul.mubr.msk.f32.vlgmr.msra.gmra.mxu1 %vm346_vm6, %v4067_v53  ;;  %3505 = vmatmul.mubr.msk.f32.vlgmr.msra.gmra.mxu0 %vm346_vm6, %v4060_v52  ;;  %v802_v5 = vpop.permute.xlu0 %801  ;;  %v726_v6 = vpop.permute.xlu1 %725 }
 0x364   :  { %3498 = vmatpush3.xpose.msk.msra.mxu1 %vm346_vm6, %v574_v62  ;;  %3513 = vmatpush3.xpose.msk.msra.mxu0 %vm346_vm6, %v802_v5 }
 0x365   :  { %3499 = vmatprep.mubr.msk.f32.mxu1 %vm3894_vm5, %v3893_v47  ;;  %3514 = vmatprep.mubr.msk.f32.mxu0 %vm3894_vm5, %v3893_v47 }
 0x366   :  { %3507 = vmatprep.subr.mxu1 %v3893_v47  ;;  %3522 = vmatprep.subr.mxu0 %v3893_v47 }
 0x367   :  { %3500 = vmatmul.mubr.msk.f32.vlgmr.msra.gmra.mxu1 %vm346_vm6, %v4073_v55  ;;  %3515 = vmatmul.mubr.msk.f32.vlgmr.msra.gmra.mxu0 %vm346_vm6, %v4075_v56  ;;  %v878_v7 = vpop.permute.xlu1 %877 }
 0x368   :  { %3508 = vmatpush3.xpose.msk.msra.mxu1 %vm346_vm6, %v726_v6  ;;  %3509 = vmatprep.mubr.msk.f32.mxu1 %vm3894_vm5, %v3893_v47 }
 0x369   :  { %3517 = vmatprep.subr.mxu1 %v3893_v47  ;;  %3524 = vmatprep.mubr.msk.f32.mxu0 %vm3894_vm5, %v3893_v47 }
 0x36b   :  { %3510 = vmatmul.mubr.msk.f32.vlgmr.msra.gmra.mxu1 %vm346_vm6, %v4079_v57 }
 0x36c   :  { %3518 = vmatpush3.xpose.msk.msra.mxu1 %vm346_vm6, %v878_v7  ;;  %3519 = vmatprep.mubr.msk.f32.mxu1 %vm3894_vm5, %v3893_v47 }
 0x36d   :  { %3527 = vmatprep.subr.mxu1 %v3893_v47 }
 0x36f   :  { %3520 = vmatmul.mubr.msk.f32.vlgmr.msra.gmra.mxu1 %vm346_vm6, %v4085_v59 }
 0x370   :  { %3529 = vmatprep.mubr.msk.f32.mxu1 %vm3894_vm5, %v3893_v47 }
 0x3b5   :  { %v417_v15 = vpop.f32.mrf.mxu1 }
 0x3b6   :  { %v953_v17 = vmul.f32 0.35355338, %v417_v15 }
 0x3b7   :  { %v3486_v18 = vpop.f32.mrf.mxu1 }
 0x3b8   :  { %v4146_v19 = vsel %vm4140_vm8, -1e+09, %v953_v17 }
 0x3b9   :  { %v983_v20 = vsel %vm346_vm6, %v4146_v19, -inf }
 0x3ba   :  { %984 = vmax.xlane.f32.xlu0 %v983_v20 }
 0x41f   :  { %v493_v22 = vpop.f32.mrf.mxu1 }
 0x420   :  { %v954_v23 = vmul.f32 0.35355338, %v493_v22 }
 0x421   :  { %v3491_v24 = vpop.f32.mrf.mxu1 }
 0x422   :  { %v976_v25 = vsel %vm4140_vm8, -1e+09, %v954_v23 }
 0x423   :  { %v569_v27 = vpop.f32.mrf.mxu1  ;;  %v721_v28 = vpop.f32.mrf.mxu0  ;;  %v986_v29 = vsel %vm346_vm6, %v976_v25, -inf }
 0x424   :  { %v955_v30 = vmul.f32 0.35355338, %v569_v27  ;;  %987 = vmax.xlane.f32.xlu1 %v986_v29  ;;  %v957_v38 = vmul.f32 0.35355338, %v721_v28 }
 0x425   :  { %v3496_v31 = vpop.f32.mrf.mxu1  ;;  %v3506_v32 = vpop.f32.mrf.mxu0 }
 0x426   :  { %v4156_v34 = vsel %vm4140_vm8, -1e+09, %v955_v30  ;;  %v979_v48 = vsel %vm4160_vm10, -1e+09, %v957_v38 }
 0x427   :  { %v645_v35 = vpop.f32.mrf.mxu1  ;;  %v873_v36 = vpop.f32.mrf.mxu0  ;;  %v989_v37 = vsel %vm346_vm6, %v4156_v34, -inf  ;;  %v995_v58 = vsel %vm346_vm6, %v979_v48, -inf }
 0x428   :  { %v956_v39 = vmul.f32 0.35355338, %v645_v35  ;;  %990 = vmax.xlane.f32.xlu0 %v989_v37  ;;  %v959_v46 = vmul.f32 0.35355338, %v873_v36 }
 0x429   :  { %v3501_v40 = vpop.f32.mrf.mxu1  ;;  %v3516_v41 = vpop.f32.mrf.mxu0 }
 0x42a   :  { %v4166_v43 = vsel %vm4140_vm8, -1e+09, %v956_v39  ;;  %v981_v60 = vsel %vm4160_vm10, -1e+09, %v959_v46 }
 0x42b   :  { %v797_v44 = vpop.f32.mrf.mxu1  ;;  %v992_v45 = vsel %vm346_vm6, %v4166_v43, -inf  ;;  %v1001_v62 = vsel %vm346_vm6, %v981_v60, -inf }
 0x42c   :  { %993 = vmax.xlane.f32.xlu0 %v992_v45  ;;  %v958_v63 = vmul.f32 0.35355338, %v797_v44 }
 0x42d   :  { %v3511_v49 = vpop.f32.mrf.mxu1 }
 0x42e   :  { %v980_v6 = vsel %vm4160_vm10, -1e+09, %v958_v63 }
 0x42f   :  { %v949_v50 = vpop.f32.mrf.mxu1  ;;  %v998_v7 = vsel %vm346_vm6, %v980_v6, -inf }
 0x430   :  { %996 = vmax.xlane.f32.xlu0 %v995_v58  ;;  %v960_v5 = vmul.f32 0.35355338, %v949_v50 }
 0x431   :  { %v3521_v61 = vpop.f32.mrf.mxu1 }
 0x432   :  { %v982_v8 = vsel %vm4160_vm10, -1e+09, %v960_v5 }
 0x433   :  { %v1004_v9 = vsel %vm346_vm6, %v982_v8, -inf }
 0x434   :  { %1002 = vmax.xlane.f32.xlu0 %v1001_v62 }
 0x435   :  { %1147 = vrot.lane.b32.xlu1 %v4069_v54, %s3900_s30 }
 0x439   :  { %1223 = vrot.lane.b32.xlu1 %v4067_v53, %s3900_s30 }
 0x443   :  { %v985_v53 = vpop.xlane.xlu0 %984 }
 0x444   :  { %v1007_v16 = vsub.f32 %v4146_v19, %v985_v53 }
 0x446   :  { %v1015_v20 = vmul.f32 1.442695, %v1007_v16 }
 0x44a   :  { %1071 = vrot.lane.b32.xlu0 %v4056_v51, %s3900_s30 }
 0x45d   :  { %999 = vmax.xlane.f32.xlu1 %v998_v7 }
 0x461   :  { %1005 = vmax.xlane.f32.xlu1 %v1004_v9 }
 0x472   :  { %1299 = vrot.lane.b32.xlu1 %v4073_v55, %s3900_s30 }
 0x4ad   :  { %v988_v54 = vpop.xlane.xlu1 %987 }
 0x4ae   :  { %v1008_v51 = vsub.f32 %v976_v25, %v988_v54 }
 0x4b0   :  { %v1017_v12 = vmul.f32 1.442695, %v1008_v51 }
 0x4b1   :  { %v1148_v13 = vpop.permute.xlu1 %1147  ;;  %v991_v14 = vpop.xlane.xlu0 %990 }
 0x4b2   :  { %3605 = vpow2.f32 %v1017_v12  ;;  %3528 = vmatpush3.msra.mxu1 %v1148_v13  ;;  %v1009_v24 = vsub.f32 %v4156_v34, %v991_v14 }
 0x4b3   :  { %3537 = vmatprep.subr.mxu1 %v3893_v47 }
 0x4b4   :  { %v1019_v19 = vmul.f32 1.442695, %v1009_v24 }
 0x4b5   :  { %v994_v15 = vpop.xlane.xlu0 %993  ;;  %v1224_v38 = vpop.permute.xlu1 %1223 }
 0x4b6   :  { %v1010_v36 = vsub.f32 %v4166_v43, %v994_v15 }
 0x4b8   :  { %v1021_v37 = vmul.f32 1.442695, %v1010_v36  ;;  %v1712_v36 = vld [vmem:[#allocation16 + $0x8] sm:$0xff] }
 0x4b9   :  { %v997_v17 = vpop.xlane.xlu0 %996 }
 0x4ba   :  { %v1011_v18 = vsub.f32 %v979_v48, %v997_v17 }
 0x4bc   :  { %v1023_v21 = vmul.f32 1.442695, %v1011_v18 }
 0x4bd   :  { %v1003_v22 = vpop.xlane.xlu0 %1002 }
 0x4be   :  { %3607 = vpow2.f32 %v1023_v21  ;;  %v1013_v55 = vsub.f32 %v981_v60, %v1003_v22 }
 0x4bf   :  { %v3606_v23 = vpop.eup %3605  ;;  %3609 = vpow2.f32 %v1015_v20 }
 0x4c0   :  { %v1027_v25 = vmul.f32 1.442695, %v1013_v55  ;;  %v1034_v26 = vsel %vm346_vm6, %v3606_v23, 0.0 }
 0x4c1   :  { %1035 = vadd.xlane.f32.xlu1 %v1034_v26  ;;  %v1072_v27 = vpop.permute.xlu0 %1071 }
 0x4c2   :  { %3523 = vmatpush3.msra.mxu0 %v1072_v27  ;;  %3611 = vpow2.f32 %v1027_v25 }
 0x4c3   :  { %3532 = vmatprep.subr.mxu0 %v3893_v47  ;;  %3613 = vpow2.f32 %v1019_v19 }
 0x4c4   :  { %3615 = vpow2.f32 %v1021_v37  ;;  %v1711_v37 = vld [vmem:[#allocation16] sm:$0xff] }
 0x4cb   :  { %v4195_v28 = vpop.eup %3607 }
 0x4cc   :  { %v1043_v29 = vsel %vm346_vm6, %v4195_v28, 0.0  ;;  %v3610_v30 = vpop.eup %3609 }
 0x4cd   :  { %1044 = vadd.xlane.f32.xlu0 %v1043_v29  ;;  %v1031_v31 = vsel %vm346_vm6, %v3610_v30, 0.0 }
 0x4cf   :  { %v4200_v32 = vpop.eup %3611 }
 0x4d0   :  { %v1049_v33 = vsel %vm346_vm6, %v4200_v32, 0.0  ;;  %v3614_v34 = vpop.eup %3613 }
 0x4d1   :  { %1032 = vadd.xlane.f32.xlu0 %v1031_v31  ;;  %v1037_v35 = vsel %vm346_vm6, %v3614_v34, 0.0  ;;  %v3616_v45 = vpop.eup %3615 }
 0x4d2   :  { %1451 = vrot.lane.b32.xlu1 %v4079_v57, %s3900_s30  ;;  %v1040_v43 = vsel %vm346_vm6, %v3616_v45, 0.0 }
 0x4d5   :  { %1050 = vadd.xlane.f32.xlu0 %v1049_v33 }
 0x4d9   :  { %1038 = vadd.xlane.f32.xlu0 %v1037_v35  ;;  %v1713_v35 = vld [vmem:[#allocation16 + $0x10] sm:$0xff] }
 0x4e6   :  { %v1000_v39 = vpop.xlane.xlu1 %999 }
 0x4e7   :  { %v1012_v40 = vsub.f32 %v980_v6, %v1000_v39 }
 0x4e9   :  { %v1025_v41 = vmul.f32 1.442695, %v1012_v40 }
 0x4ea   :  { %v1006_v42 = vpop.xlane.xlu1 %1005 }
 0x4eb   :  { %3617 = vpow2.f32 %v1025_v41  ;;  %v1014_v44 = vsub.f32 %v982_v8, %v1006_v42 }
 0x4ed   :  { %v1029_v57 = vmul.f32 1.442695, %v1014_v44 }
 0x4ef   :  { %3619 = vpow2.f32 %v1029_v57  ;;  %1375 = vrot.lane.b32.xlu0 %v4060_v52, %s3900_s30  ;;  %v1300_v52 = vpop.permute.xlu1 %1299 }
 0x4f3   :  { %1527 = vrot.lane.b32.xlu0 %v4075_v56, %s3900_s30 }
 0x4f6   :  { %1041 = vadd.xlane.f32.xlu1 %v1040_v43 }
 0x4f8   :  { %v3618_v46 = vpop.eup %3617 }
 0x4f9   :  { %v1046_v48 = vsel %vm346_vm6, %v3618_v46, 0.0 }
 0x4fa   :  { %1047 = vadd.xlane.f32.xlu1 %v1046_v48 }
 0x4fc   :  { %v4214_v49 = vpop.eup %3619 }
 0x4fd   :  { %v1052_v50 = vsel %vm346_vm6, %v4214_v49, 0.0 }
 0x4fe   :  { %1053 = vadd.xlane.f32.xlu1 %v1052_v50 }
 0x50f   :  { %1603 = vrot.lane.b32.xlu1 %v4085_v59, %s3900_s30 }
 0x54a   :  { %v1036_v58 = vpop.xlane.xlu1 %1035 }
 0x54b   :  { %3621 = vrcp.f32 %v1036_v58 }
 0x54e   :  { %v1452_v14 = vpop.permute.xlu1 %1451 }
 0x556   :  { %v1045_v56 = vpop.xlane.xlu0 %1044 }
 0x558   :  { %v3622_v60 = vpop.eup %3621 }
 0x559   :  { %v1064_v61 = vmul.f32 %v3622_v60, %v3606_v23 }
 0x55a   :  { %v1033_v62 = vpop.xlane.xlu0 %1032 }
 0x55b   :  { %3623 = vrcp.f32 %v1033_v62  ;;  %3530 = vmatmul.mubr.msk.f32.vlgmr.msra.gmra.mxu1 %vm346_vm6, %v1064_v61  ;;  %v3403_v62 = vld [vmem:[#allocation17] ss:$0 sm:$0xff] }
 0x55c   :  { %3538 = vmatpush3.msra.mxu1 %v1300_v52  ;;  %3539 = vmatprep.mubr.msk.f32.mxu1 %vm3894_vm5, %v3893_v47 }
 0x55d   :  { %3547 = vmatprep.subr.mxu1 %v3893_v47 }
 0x55e   :  { %v1051_v63 = vpop.xlane.xlu0 %1050 }
 0x562   :  { %v1039_v5 = vpop.xlane.xlu0 %1038 }
 0x563   :  { %3625 = vrcp.f32 %v1039_v5 }
 0x564   :  { %3627 = vrcp.f32 %v1045_v56 }
 0x565   :  { %3629 = vrcp.f32 %v1051_v63 }
 0x566   :  { %v1376_v8 = vpop.permute.xlu0 %1375 }
 0x568   :  { %v3624_v59 = vpop.eup %3623 }
 0x569   :  { %v1063_v6 = vmul.f32 %v3624_v59, %v3610_v30 }
 0x56a   :  { %v1528_v12 = vpop.permute.xlu0 %1527 }
 0x56b   :  { %3525 = vmatmul.mubr.msk.f32.vlgmr.msra.gmra.mxu0 %vm346_vm6, %v1063_v6 }
 0x56c   :  { %3533 = vmatpush3.msra.mxu0 %v1224_v38  ;;  %3534 = vmatprep.mubr.msk.f32.mxu0 %vm3894_vm5, %v3893_v47 }
 0x56d   :  { %3542 = vmatprep.subr.mxu0 %v3893_v47 }
 0x570   :  { %v3626_v7 = vpop.eup %3625 }
 0x571   :  { %v1065_v9 = vmul.f32 %v3626_v7, %v3614_v34  ;;  %v3628_v53 = vpop.eup %3627  ;;  %v1714_v34 = vld [vmem:[#allocation16 + $0x18] sm:$0xff] }
 0x572   :  { %v1067_v54 = vmul.f32 %v3628_v53, %v4195_v28  ;;  %v3630_v51 = vpop.eup %3629 }
 0x573   :  { %3535 = vmatmul.mubr.msk.f32.vlgmr.msra.gmra.mxu0 %vm346_vm6, %v1065_v9  ;;  %v1069_v13 = vmul.f32 %v3630_v51, %v4200_v32 }
 0x574   :  { %3543 = vmatpush3.msra.mxu0 %v1376_v8  ;;  %3544 = vmatprep.mubr.msk.f32.mxu0 %vm3894_vm5, %v3893_v47 }
 0x575   :  { %3552 = vmatprep.subr.mxu0 %v3893_v47 }
 0x577   :  { %3545 = vmatmul.mubr.msk.f32.vlgmr.msra.gmra.mxu0 %vm346_vm6, %v1067_v54 }
 0x578   :  { %3553 = vmatpush3.msra.mxu0 %v1528_v12  ;;  %3554 = vmatprep.mubr.msk.f32.mxu0 %vm3894_vm5, %v3893_v47 }
 0x579   :  { %3562 = vmatprep.subr.mxu0 %v1714_v34 }
 0x57b   :  { %3555 = vmatmul.mubr.msk.f32.vlgmr.msra.gmra.mxu0 %vm346_vm6, %v1069_v13 }
 0x57c   :  { %3563 = vmatpush3.msra.mxu0 %v1714_v34 }
 0x57d   :  { %3564 = vmatprep.subr.mxu0 %v1713_v35 }
 0x57e   :  { %3565 = vmatpush3.msra.mxu0 %v1713_v35 }
 0x57f   :  { %v1042_v15 = vpop.xlane.xlu1 %1041  ;;  %3566 = vmatprep.subr.mxu0 %v1712_v36 }
 0x580   :  { %3631 = vrcp.f32 %v1042_v15  ;;  %3567 = vmatpush3.msra.mxu0 %v1712_v36 }
 0x581   :  { %3568 = vmatprep.subr.mxu0 %v1711_v37 }
 0x582   :  { %3569 = vmatpush3.msra.mxu0 %v1711_v37 }
 0x583   :  { %v1048_v16 = vpop.xlane.xlu1 %1047 }
 0x584   :  { %3633 = vrcp.f32 %v1048_v16 }
 0x587   :  { %v1054_v17 = vpop.xlane.xlu1 %1053 }
 0x588   :  { %3635 = vrcp.f32 %v1054_v17 }
 0x58b   :  { %v1604_v55 = vpop.permute.xlu1 %1603 }
 0x58d   :  { %v3632_v18 = vpop.eup %3631 }
 0x58e   :  { %v1066_v20 = vmul.f32 %v3632_v18, %v3616_v45 }
 0x590   :  { %3540 = vmatmul.mubr.msk.f32.vlgmr.msra.gmra.mxu1 %vm346_vm6, %v1066_v20 }
 0x591   :  { %v3634_v21 = vpop.eup %3633  ;;  %3548 = vmatpush3.msra.mxu1 %v1452_v14  ;;  %3549 = vmatprep.mubr.msk.f32.mxu1 %vm3894_vm5, %v3893_v47 }
 0x592   :  { %3557 = vmatprep.subr.mxu1 %v3893_v47  ;;  %v1068_v22 = vmul.f32 %v3634_v21, %v3618_v46 }
 0x594   :  { %3550 = vmatmul.mubr.msk.f32.vlgmr.msra.gmra.mxu1 %vm346_vm6, %v1068_v22 }
 0x595   :  { %v3636_v23 = vpop.eup %3635  ;;  %3558 = vmatpush3.msra.mxu1 %v1604_v55  ;;  %3559 = vmatprep.mubr.msk.f32.mxu1 %vm3894_vm5, %v3893_v47 }
 0x596   :  { %v1070_v24 = vmul.f32 %v3636_v23, %v4214_v49 }
 0x598   :  { %3560 = vmatmul.mubr.msk.f32.vlgmr.msra.gmra.mxu1 %vm346_vm6, %v1070_v24 }
 0x61b   :  { %v1219_v25 = vpop.f32.mrf.mxu1 }
 0x61c   :  { %1681 = vrot.lane.b32.xlu0 %v1219_v25, %s3888_s19 }
 0x61d   :  { %v3531_v26 = vpop.f32.mrf.mxu1 }
 0x62b   :  { %v1143_v27 = vpop.f32.mrf.mxu0 }
 0x62d   :  { %v3526_v19 = vpop.f32.mrf.mxu0 }
 0x633   :  { %v1295_v28 = vpop.f32.mrf.mxu0 }
 0x634   :  { %1689 = vrot.lane.b32.xlu0 %v1295_v28, %s3882_s16 }
 0x635   :  { %v3536_v29 = vpop.f32.mrf.mxu0 }
 0x637   :  { %v1447_v30 = vpop.f32.mrf.mxu0 }
 0x639   :  { %v3546_v31 = vpop.f32.mrf.mxu0 }
 0x63b   :  { %v1599_v32 = vpop.f32.mrf.mxu0 }
 0x63d   :  { %v3556_v33 = vpop.f32.mrf.mxu0 }
 0x650   :  { %v1371_v38 = vpop.f32.mrf.mxu1 }
 0x651   :  { %1697 = vrot.lane.b32.xlu0 %v1371_v38, %s3901_s15 }
 0x652   :  { %v3541_v39 = vpop.f32.mrf.mxu1 }
 0x654   :  { %v1523_v40 = vpop.f32.mrf.mxu1 }
 0x655   :  { %1683 = vrot.lane.b32.xlu1 %v1523_v40, %s3888_s19 }
 0x656   :  { %v3551_v41 = vpop.f32.mrf.mxu1 }
 0x658   :  { %v1675_v42 = vpop.f32.mrf.mxu1 }
 0x659   :  { %1691 = vrot.lane.b32.xlu1 %v1599_v32, %s3882_s16  ;;  %s3902_s16 = smov [#allocation2]  }
 0x65a   :  { %v3561_v44 = vpop.f32.mrf.mxu1  ;;  %s152_s17 = sshll.u32 %s3902_s16, 4  ;;  %s153_s17 = int_to_ptr.vmem [resolvable:$true] %s152_s17 }
 0x65b   :  { %s3813_s20 = scalar_lea.vmem %s153_s17, 8192  ;;  %p3818_p13 = scmp.lt.s32.totalorder %s153_s17, %s153_s17 }
 0x65c   :  { %p3814_p12 = scmp.ne.s32.totalorder %s153_s17, %s3813_s20  ;;  %p3819_p0 = scmp.lt.s32.totalorder %s3813_s20, %s3813_s20 }
 0x65d   :  { %1699 = vrot.lane.b32.xlu1 %v1675_v42, %s3901_s15 }
 0x65e   :  { %p3820_p1 = por %p3819_p0, %p3818_p13 }
 0x660   :  { %p3821_p2 = pnand %p3820_p1, %p3814_p12 }
 0x68e   :  { %v1682_v57 = vpop.permute.xlu0 %1681 }
 0x68f   :  { %v1703_v43 = vsel %vm346_vm6, %v1143_v27, %v1682_v57 }
 0x6a6   :  { %v1690_v45 = vpop.permute.xlu0 %1689 }
 0x6a7   :  { %v1706_v46 = vsel %vm1705_vm11, %v1703_v43, %v1690_v45 }
 0x6c3   :  { %v1698_v48 = vpop.permute.xlu0 %1697 }
 0x6c4   :  { %v1709_v49 = vsel %vm1708_vm12, %v1706_v46, %v1698_v48 }
 0x6c5   :  { %3570 = vmatprep.mubr.msk.f32.mxu0 %vm181_vm0, %v1709_v49 }
 0x6c7   :  { %v1684_v50 = vpop.permute.xlu1 %1683 }
 0x6c8   :  { %v1704_v58 = vsel %vm346_vm6, %v1447_v30, %v1684_v50 }
 0x6cb   :  { %v1692_v52 = vpop.permute.xlu1 %1691 }
 0x6cc   :  { %v1707_v56 = vsel %vm1705_vm11, %v1704_v58, %v1692_v52 }
 0x6cf   :  { %v1700_v60 = vpop.permute.xlu1 %1699 }
 0x6d0   :  { %v1710_v61 = vsel %vm1708_vm12, %v1707_v56, %v1700_v60 }
 0x6d1   :  { %3571 = vmatmul.mubr.msk.f32.vlgmr.msra.gmra.mxu0 %vm181_vm0, %v1710_v61 }
 0x791   :  { %v3572_v63 = vpop.f32.mrf.mxu0 }
 0x792   :  { %v1799_v5 = vadd.f32 %v3572_v63, %v3403_v62 }
 0x793   :  { %v1793_v59 = vpop.f32.mrf.mxu0 }
 0x794   :  { %v1794_v6 = vadd.f32 %v3403_v62, %v1793_v59  ;;  %v4256_v7 = vadd.f32 %v1799_v5, %v4032_v4 }
 0x796   :  { %v1807_v8 = vsel %vm181_vm0, %v4256_v7, 0.0  ;;  %v4261_v9 = vadd.f32 %v1794_v6, %v4030_v3 }
 0x797   :  { %1808 = vadd.xlane.f32.xlu1 %v1807_v8 }
 0x798   :  { %v1804_v53 = vsel %vm181_vm0, %v4261_v9, 0.0 }
 0x799   :  { %1805 = vadd.xlane.f32.xlu0 %v1804_v53 }
 0x820   :  { %v1809_v54 = vpop.xlane.xlu1 %1808 }
 0x821   :  { %v1811_v51 = vmul.f32 0.03125, %v1809_v54 }
 0x822   :  { %v1806_v12 = vpop.xlane.xlu0 %1805 }
 0x823   :  { %v1810_v13 = vmul.f32 0.03125, %v1806_v12  ;;  %v1813_v14 = vsub.f32 %v4256_v7, %v1811_v51 }
 0x825   :  { %v1812_v4 = vsub.f32 %v4261_v9, %v1810_v13  ;;  %v1815_v17 = vmul.f32 %v1813_v14, %v1813_v14 }
 0x827   :  { %v1814_v15 = vmul.f32 %v1812_v4, %v1812_v4  ;;  %v1819_v3 = vsel %vm181_vm0, %v1815_v17, 0.0 }
 0x829   :  { %v1816_v16 = vsel %vm181_vm0, %v1814_v15, 0.0 }
 0x82a   :  { %1817 = vadd.xlane.f32.xlu0 %v1816_v16 }
 0x82e   :  { %1820 = vadd.xlane.f32.xlu0 %v1819_v3 }
 0x82f   :  { %3824 = shalt.err (!%p3821_p2)  }
 0x830   :  { %155 = dma.hbm_to_vmem [thread:$0]  %s4560_s12, 8192, %s153_s17, [#allocation4] }
 0x831   :  { %s3833_s7 = scalar_lea.vmem %s165_s4, 8192  ;;  %p3838_p4 = scmp.lt.s32.totalorder %s165_s4, %s165_s4 }
 0x832   :  { %p3834_p3 = scmp.ne.s32.totalorder %s165_s4, %s3833_s7  ;;  %p3839_p5 = scmp.lt.s32.totalorder %s3833_s7, %s3833_s7 }
 0x834   :  { %p3840_p6 = por %p3839_p5, %p3838_p4 }
 0x836   :  { %p3841_p7 = pnand %p3840_p6, %p3834_p3 }
 0x838   :  { %3844 = shalt.err (!%p3841_p7)  }
 0x839   :  { %167 = dma.hbm_to_vmem [thread:$0]  %s4561_s13, 8192, %s165_s4, [#allocation4 + $0x1]  ;;  %v3406_v33 = vld [vmem:[#allocation10] ss:$0 sm:$0xff]  ;;  %v3407_v36 = vld [vmem:[#allocation11] ss:$0 sm:$0xff] }
 0x83a   :  { %v1848_v34 = vmul.f32 %v3406_v33, %v1812_v4  ;;  %v1849_v38 = vmul.f32 %v3406_v33, %v1813_v14 }
 0x8b3   :  { %v1818_v18 = vpop.xlane.xlu0 %1817 }
 0x8b4   :  { %v1822_v20 = vmul.f32 0.032258064, %v1818_v18 }
 0x8b6   :  { %3637 = vrsqrt.f32 %v1822_v20  ;;  %vm1826_vm13 = vcmp.eq.f32.partialorder %v1822_v20, inf  ;;  %v1829_v24 = vand.u32 2147483648, %v1822_v20  ;;  %vm1828_vm14 = vcmp.eq.f32.partialorder %v1822_v20, 0.0 }
 0x8b7   :  { %v1821_v21 = vpop.xlane.xlu0 %1820 }
 0x8b8   :  { %v1823_v22 = vmul.f32 0.032258064, %v1821_v21 }
 0x8ba   :  { %3639 = vrsqrt.f32 %v1823_v22  ;;  %vm1833_vm15 = vcmp.eq.f32.partialorder %v1823_v22, inf  ;;  %v1836_v29 = vand.u32 2147483648, %v1823_v22  ;;  %vm1835_vm1 = vcmp.eq.f32.partialorder %v1823_v22, 0.0 }
 0x8c3   :  { %v3638_v55 = vpop.eup %3637 }
 0x8c4   :  { %v1825_v23 = vmul.f32 %v3638_v55, %v1822_v20 }
 0x8c6   :  { %v1827_v25 = vsel %vm1826_vm13, %v1822_v20, %v1825_v23 }
 0x8c7   :  { %v3640_v26 = vpop.eup %3639  ;;  %v1830_v27 = vsel %vm1828_vm14, %v1829_v24, %v1827_v25 }
 0x8c8   :  { %v1838_v19 = vadd.f32 1e-06, %v1830_v27  ;;  %v1832_v28 = vmul.f32 %v3640_v26, %v1823_v22 }
 0x8ca   :  { %3641 = vrcp.f32 %v1838_v19  ;;  %v1834_v30 = vsel %vm1833_vm15, %v1823_v22, %v1832_v28 }
 0x8cb   :  { %v1837_v31 = vsel %vm1835_vm1, %v1836_v29, %v1834_v30 }
 0x8cc   :  { %v1839_v32 = vadd.f32 1e-06, %v1837_v31 }
 0x8ce   :  { %3643 = vrcp.f32 %v1839_v32 }
 0x8d7   :  { %v3642_v35 = vpop.eup %3641 }
 0x8d8   :  { %v1850_v37 = vmul.f32 %v3642_v35, %v1848_v34 }
 0x8da   :  { %v4275_v39 = vadd.f32 %v3407_v36, %v1850_v37 }
 0x8db   :  { %v3644_v40 = vpop.eup %3643 }
 0x8dc   :  { %v1851_v41 = vmul.f32 %v3644_v40, %v1849_v38 }
 0x8de   :  { %v4277_v42 = vadd.f32 %v3407_v36, %v1851_v41 }
 0x8df   :  { %3875 = dma.done.wait [#allocation4], 8192 }
 0x8e0   :  { %3876 = vsyncadd [#allocation4], 4294959104  ;;  %2080 = vmatprep.mubr.f32.mxu1 %v3893_v47  ;;  %2157 = vmatprep.mubr.f32.mxu0 %v3893_v47  ;;  %v1913_v44 = vld [vmem:[#allocation2 + $0x188] sm:$0xff]  ;;  %v1915_v57 = vld [vmem:[#allocation2 + $0x198] sm:$0xff] }
 0x8e1   :  { %v1912_v45 = vld [vmem:[#allocation2 + $0x180] sm:$0xff]  ;;  %2040 = vmatprep.subr.mxu1 %v1913_v44  ;;  %2117 = vmatprep.subr.mxu0 %v1915_v57  ;;  %v1914_v43 = vld [vmem:[#allocation2 + $0x190] sm:$0xff]  ;;  %v1897_v46 = vld [vmem:[#allocation2 + $0x108] sm:$0xff] }
 0x8e2   :  { %v1899_v48 = vld [vmem:[#allocation2 + $0x118] sm:$0xff]  ;;  %2041 = vmatpush1.msra.mxu1 %v1912_v45  ;;  %2118 = vmatpush1.msra.mxu0 %v1914_v43  ;;  %v1896_v49 = vld [vmem:[#allocation2 + $0x100] sm:$0xff]  ;;  %v1898_v50 = vld [vmem:[#allocation2 + $0x110] sm:$0xff] }
 0x8e3   :  { %v1881_v52 = vld [vmem:[#allocation2 + $0x88] sm:$0xff]  ;;  %2042 = vmatprep.subr.mxu1 %v1897_v46  ;;  %2119 = vmatprep.subr.mxu0 %v1899_v48  ;;  %v1883_v58 = vld [vmem:[#allocation2 + $0x98] sm:$0xff]  ;;  %v1880_v56 = vld [vmem:[#allocation2 + $0x80] sm:$0xff] }
 0x8e4   :  { %v1882_v60 = vld [vmem:[#allocation2 + $0x90] sm:$0xff]  ;;  %2043 = vmatpush1.msra.mxu1 %v1896_v49  ;;  %2120 = vmatpush1.msra.mxu0 %v1898_v50  ;;  %v1865_v61 = vld [vmem:[#allocation2 + $0x8] sm:$0xff]  ;;  %v1867_v62 = vld [vmem:[#allocation2 + $0x18] sm:$0xff] }
 0x8e5   :  { %2044 = vmatprep.subr.mxu1 %v1881_v52  ;;  %2121 = vmatprep.subr.mxu0 %v1883_v58  ;;  %v1864_v63 = vld [vmem:[#allocation2] sm:$0xff]  ;;  %v1866_v5 = vld [vmem:[#allocation2 + $0x10] sm:$0xff]  ;;  %v1917_v59 = vld [vmem:[#allocation2 + $0x1a8] sm:$0xff] }
 0x8e6   :  { %2045 = vmatpush1.msra.mxu1 %v1880_v56  ;;  %2122 = vmatpush1.msra.mxu0 %v1882_v60  ;;  %v1919_v6 = vld [vmem:[#allocation2 + $0x1b8] sm:$0xff]  ;;  %v1916_v8 = vld [vmem:[#allocation2 + $0x1a0] sm:$0xff]  ;;  %v1918_v53 = vld [vmem:[#allocation2 + $0x1b0] sm:$0xff]  ;;  %v1940_v56 = vsub.s32 2, %v4134_v10  ;;  %v1936_v60 = vsub.s32 1, %v4134_v10 }
 0x8e7   :  { %2046 = vmatprep.subr.mxu1 %v1865_v61  ;;  %2123 = vmatprep.subr.mxu0 %v1867_v62  ;;  %v1901_v54 = vld [vmem:[#allocation2 + $0x128] sm:$0xff]  ;;  %v1903_v51 = vld [vmem:[#allocation2 + $0x138] sm:$0xff]  ;;  %v1900_v12 = vld [vmem:[#allocation2 + $0x120] sm:$0xff]  ;;  %v1944_v61 = vsub.s32 3, %v4134_v10  ;;  %v1933_v62 = vrot.slane %v4018_v0, %v4137_v11 }
 0x8e8   :  { %2047 = vmatpush1.msra.mxu1 %v1864_v63  ;;  %2124 = vmatpush1.msra.mxu0 %v1866_v5  ;;  %v1902_v13 = vld [vmem:[#allocation2 + $0x130] sm:$0xff]  ;;  %v1885_v14 = vld [vmem:[#allocation2 + $0xa8] sm:$0xff]  ;;  %v1887_v4 = vld [vmem:[#allocation2 + $0xb8] sm:$0xff] }
 0x8e9   :  { %3408 = vmatmul.mubr.msk.f32.vlgmr.msra.gmra.mxu1 %vm181_vm0, %v4275_v39  ;;  %3410 = vmatmul.mubr.msk.f32.vlgmr.msra.gmra.mxu0 %vm181_vm0, %v4275_v39  ;;  %v1884_v15 = vld [vmem:[#allocation2 + $0xa0] sm:$0xff]  ;;  %v1886_v16 = vld [vmem:[#allocation2 + $0xb0] sm:$0xff]  ;;  %v1869_v17 = vld [vmem:[#allocation2 + $0x28] sm:$0xff]  ;;  %v1945_v63 = vrot.slane %v4018_v0, %v1944_v61 }
 0x8ea   :  { %2194 = vmatprep.subr.mxu1 %v1917_v59  ;;  %2271 = vmatprep.subr.mxu0 %v1919_v6  ;;  %v1871_v3 = vld [vmem:[#allocation2 + $0x38] sm:$0xff]  ;;  %v1868_v18 = vld [vmem:[#allocation2 + $0x20] sm:$0xff]  ;;  %v1870_v20 = vld [vmem:[#allocation2 + $0x30] sm:$0xff] }
 0x8eb   :  { %2195 = vmatpush1.msra.mxu1 %v1916_v8  ;;  %2272 = vmatpush1.msra.mxu0 %v1918_v53  ;;  %v1921_v21 = vld [vmem:[#allocation2 + $0x1c8] sm:$0xff]  ;;  %v1923_v22 = vld [vmem:[#allocation2 + $0x1d8] sm:$0xff]  ;;  %v1920_v55 = vld [vmem:[#allocation2 + $0x1c0] sm:$0xff] }
 0x8ec   :  { %2196 = vmatprep.subr.mxu1 %v1901_v54  ;;  %2273 = vmatprep.subr.mxu0 %v1903_v51  ;;  %v1922_v23 = vld [vmem:[#allocation2 + $0x1d0] sm:$0xff]  ;;  %v1905_v24 = vld [vmem:[#allocation2 + $0x148] sm:$0xff]  ;;  %v1907_v25 = vld [vmem:[#allocation2 + $0x158] sm:$0xff] }
 0x8ed   :  { %2086 = vmatprep.mubr.f32.mxu1 %v3893_v47  ;;  %2163 = vmatprep.mubr.f32.mxu0 %v3893_v47  ;;  %v1904_v26 = vld [vmem:[#allocation2 + $0x140] sm:$0xff]  ;;  %v1906_v27 = vld [vmem:[#allocation2 + $0x150] sm:$0xff]  ;;  %v1889_v19 = vld [vmem:[#allocation2 + $0xc8] sm:$0xff] }
 0x8ee   :  { %2197 = vmatpush1.msra.mxu1 %v1900_v12  ;;  %2274 = vmatpush1.msra.mxu0 %v1902_v13  ;;  %v1891_v28 = vld [vmem:[#allocation2 + $0xd8] sm:$0xff]  ;;  %v1888_v29 = vld [vmem:[#allocation2 + $0xc0] sm:$0xff]  ;;  %v1890_v30 = vld [vmem:[#allocation2 + $0xd0] sm:$0xff] }
 0x8ef   :  { %3409 = vmatmul.mubr.msk.f32.gmra.mxu1 %vm181_vm0, %v4277_v42  ;;  %3411 = vmatmul.mubr.msk.f32.gmra.mxu0 %vm181_vm0, %v4277_v42  ;;  %v1873_v31 = vld [vmem:[#allocation2 + $0x48] sm:$0xff]  ;;  %v1875_v32 = vld [vmem:[#allocation2 + $0x58] sm:$0xff]  ;;  %v1872_v33 = vld [vmem:[#allocation2 + $0x40] sm:$0xff] }
 0x8f0   :  { %2198 = vmatprep.subr.mxu1 %v1885_v14  ;;  %2275 = vmatprep.subr.mxu0 %v1887_v4  ;;  %v1874_v34 = vld [vmem:[#allocation2 + $0x50] sm:$0xff]  ;;  %v1925_v35 = vld [vmem:[#allocation2 + $0x1e8] sm:$0xff]  ;;  %v1927_v36 = vld [vmem:[#allocation2 + $0x1f8] sm:$0xff]  ;;  %v1948_v14 = vsub.s32 4, %v4134_v10  ;;  %v1956_v4 = vsub.s32 6, %v4134_v10 }
 0x8f1   :  { %2199 = vmatpush1.msra.mxu1 %v1884_v15  ;;  %2276 = vmatpush1.msra.mxu0 %v1886_v16  ;;  %v1924_v37 = vld [vmem:[#allocation2 + $0x1e0] sm:$0xff]  ;;  %v1926_v38 = vld [vmem:[#allocation2 + $0x1f0] sm:$0xff]  ;;  %v1909_v40 = vld [vmem:[#allocation2 + $0x168] sm:$0xff] }
 0x8f2   :  { %2200 = vmatprep.subr.mxu1 %v1869_v17  ;;  %2277 = vmatprep.subr.mxu0 %v1871_v3  ;;  %v1911_v41 = vld [vmem:[#allocation2 + $0x178] sm:$0xff]  ;;  %v1908_v44 = vld [vmem:[#allocation2 + $0x160] sm:$0xff]  ;;  %v1910_v57 = vld [vmem:[#allocation2 + $0x170] sm:$0xff] }
 0x8f3   :  { %2201 = vmatpush1.msra.mxu1 %v1868_v18  ;;  %2234 = vmatprep.mubr.f32.mxu1 %v3893_v47  ;;  %v1893_v45 = vld [vmem:[#allocation2 + $0xe8] sm:$0xff]  ;;  %v1895_v43 = vld [vmem:[#allocation2 + $0xf8] sm:$0xff]  ;;  %v1892_v46 = vld [vmem:[#allocation2 + $0xe0] sm:$0xff] }
 0x8f4   :  { %2278 = vmatpush1.msra.mxu0 %v1870_v20  ;;  %2311 = vmatprep.mubr.f32.mxu0 %v3893_v47  ;;  %v1894_v48 = vld [vmem:[#allocation2 + $0xf0] sm:$0xff]  ;;  %v1877_v49 = vld [vmem:[#allocation2 + $0x68] sm:$0xff]  ;;  %v1879_v50 = vld [vmem:[#allocation2 + $0x78] sm:$0xff] }
 0x8f5   :  { %3412 = vmatmul.mubr.msk.f32.vlgmr.msra.gmra.mxu1 %vm181_vm0, %v4275_v39  ;;  %3414 = vmatmul.mubr.msk.f32.vlgmr.msra.gmra.mxu0 %vm181_vm0, %v4275_v39  ;;  %v1876_v52 = vld [vmem:[#allocation2 + $0x60] sm:$0xff]  ;;  %v1878_v58 = vld [vmem:[#allocation2 + $0x70] sm:$0xff] }
 0x8f6   :  { %2348 = vmatprep.subr.mxu1 %v1921_v21  ;;  %2425 = vmatprep.subr.mxu0 %v1923_v22  ;;  %v1952_v21 = vsub.s32 5, %v4134_v10  ;;  %v1960_v22 = vsub.s32 7, %v4134_v10 }
 0x8f7   :  { %2349 = vmatpush1.msra.mxu1 %v1920_v55  ;;  %2426 = vmatpush1.msra.mxu0 %v1922_v23 }
 0x8f8   :  { %2350 = vmatprep.subr.mxu1 %v1905_v24  ;;  %2427 = vmatprep.subr.mxu0 %v1907_v25  ;;  %v1949_v24 = vrot.slane %v4018_v0, %v1948_v14  ;;  %v1957_v25 = vrot.slane %v4018_v0, %v1956_v4 }
 0x8f9   :  { %2240 = vmatprep.mubr.f32.mxu1 %v3893_v47  ;;  %2317 = vmatprep.mubr.f32.mxu0 %v3893_v47 }
 0x8fa   :  { %2351 = vmatpush1.msra.mxu1 %v1904_v26  ;;  %2428 = vmatpush1.msra.mxu0 %v1906_v27 }
 0x8fb   :  { %3413 = vmatmul.mubr.msk.f32.gmra.mxu1 %vm181_vm0, %v4277_v42  ;;  %3415 = vmatmul.mubr.msk.f32.gmra.mxu0 %vm181_vm0, %v4277_v42 }
 0x8fc   :  { %2352 = vmatprep.subr.mxu1 %v1889_v19  ;;  %2429 = vmatprep.subr.mxu0 %v1891_v28 }
 0x8fd   :  { %2353 = vmatpush1.msra.mxu1 %v1888_v29  ;;  %2430 = vmatpush1.msra.mxu0 %v1890_v30 }
 0x8fe   :  { %2354 = vmatprep.subr.mxu1 %v1873_v31  ;;  %2431 = vmatprep.subr.mxu0 %v1875_v32  ;;  %v1953_v31 = vrot.slane %v4018_v0, %v1952_v21  ;;  %v1961_v32 = vrot.slane %v4018_v0, %v1960_v22 }
 0x8ff   :  { %2355 = vmatpush1.msra.mxu1 %v1872_v33  ;;  %2388 = vmatprep.mubr.f32.mxu1 %v3893_v47 }
 0x900   :  { %2432 = vmatpush1.msra.mxu0 %v1874_v34  ;;  %2465 = vmatprep.mubr.f32.mxu0 %v3893_v47 }
 0x901   :  { %3416 = vmatmul.mubr.msk.f32.vlgmr.msra.gmra.mxu1 %vm181_vm0, %v4275_v39  ;;  %3418 = vmatmul.mubr.msk.f32.vlgmr.msra.gmra.mxu0 %vm181_vm0, %v4275_v39 }
 0x902   :  { %2502 = vmatprep.subr.mxu1 %v1925_v35  ;;  %2579 = vmatprep.subr.mxu0 %v1927_v36 }
 0x903   :  { %2503 = vmatpush1.msra.mxu1 %v1924_v37  ;;  %2580 = vmatpush1.msra.mxu0 %v1926_v38 }
 0x904   :  { %2504 = vmatprep.subr.mxu1 %v1909_v40  ;;  %2581 = vmatprep.subr.mxu0 %v1911_v41 }
 0x905   :  { %2394 = vmatprep.mubr.f32.mxu1 %v3893_v47  ;;  %2471 = vmatprep.mubr.f32.mxu0 %v3893_v47 }
 0x906   :  { %2505 = vmatpush1.msra.mxu1 %v1908_v44  ;;  %2582 = vmatpush1.msra.mxu0 %v1910_v57 }
 0x907   :  { %3417 = vmatmul.mubr.msk.f32.gmra.mxu1 %vm181_vm0, %v4277_v42  ;;  %3419 = vmatmul.mubr.msk.f32.gmra.mxu0 %vm181_vm0, %v4277_v42 }
 0x908   :  { %2506 = vmatprep.subr.mxu1 %v1893_v45  ;;  %2583 = vmatprep.subr.mxu0 %v1895_v43 }
 0x909   :  { %2507 = vmatpush1.msra.mxu1 %v1892_v46  ;;  %2584 = vmatpush1.msra.mxu0 %v1894_v48 }
 0x90a   :  { %2508 = vmatprep.subr.mxu1 %v1877_v49  ;;  %2585 = vmatprep.subr.mxu0 %v1879_v50 }
 0x90b   :  { %2509 = vmatpush1.msra.mxu1 %v1876_v52  ;;  %2542 = vmatprep.mubr.f32.mxu1 %v3893_v47 }
 0x90c   :  { %2586 = vmatpush1.msra.mxu0 %v1878_v58  ;;  %2619 = vmatprep.mubr.f32.mxu0 %v3893_v47  ;;  %v1965_v58 = vrot.slane %v4023_v1, %v4137_v11  ;;  %v1977_v11 = vrot.slane %v4023_v1, %v1944_v61 }
 0x90d   :  { %3420 = vmatmul.mubr.msk.f32.vlgmr.msra.gmra.mxu1 %vm181_vm0, %v4275_v39  ;;  %3422 = vmatmul.mubr.msk.f32.vlgmr.msra.gmra.mxu0 %vm181_vm0, %v4275_v39  ;;  %v1941_v39 = vrot.slane %v4018_v0, %v1940_v56 }
 0x90e   :  { %2548 = vmatprep.mubr.f32.mxu1 %v3893_v47  ;;  %2625 = vmatprep.mubr.f32.mxu0 %v3893_v47  ;;  %v1937_v47 = vrot.slane %v4018_v0, %v1936_v60 }
 0x911   :  { %3421 = vmatmul.mubr.msk.f32.gmra.mxu1 %vm181_vm0, %v4277_v42  ;;  %3423 = vmatmul.mubr.msk.f32.gmra.mxu0 %vm181_vm0, %v4277_v42 }
 0x9a9   :  { %v2082_v42 = vpop.f32.mrf.mxu1  ;;  %v2159_v5 = vpop.f32.mrf.mxu0 }
 0x9aa   :  { %v4339_v59 = vadd.f32 %v2082_v42, %v1933_v62  ;;  %v4341_v6 = vadd.f32 %v2159_v5, %v1941_v39 }
 0x9ab   :  { %v2084_v8 = vpop.f32.mrf.mxu1  ;;  %v2161_v53 = vpop.f32.mrf.mxu0 }
 0x9ac   :  { %v2632_v54 = vmax.f32 %v4339_v59, 0.0  ;;  %v2634_v51 = vmax.f32 %v4341_v6, 0.0  ;;  %v4345_v12 = vadd.f32 %v2084_v8, %v1937_v47  ;;  %v4347_v13 = vadd.f32 %v2161_v53, %v1945_v63 }
 0x9ad   :  { %v1969_v53 = vrot.slane %v4023_v1, %v1936_v60 }
 0x9ae   :  { %v2633_v15 = vmax.f32 %v4345_v12, 0.0  ;;  %v2635_v16 = vmax.f32 %v4347_v13, 0.0 }
 0x9af   :  { %v2088_v17 = vpop.f32.mrf.mxu1  ;;  %v2165_v3 = vpop.f32.mrf.mxu0 }
 0x9b0   :  { %v4353_v18 = vadd.f32 %v2088_v17, %v1933_v62  ;;  %v4355_v20 = vadd.f32 %v2165_v3, %v1941_v39  ;;  %v1973_v62 = vrot.slane %v4023_v1, %v1940_v56 }
 0x9b1   :  { %v2090_v55 = vpop.f32.mrf.mxu1  ;;  %v2167_v23 = vpop.f32.mrf.mxu0 }
 0x9b2   :  { %v2648_v26 = vmax.f32 %v4353_v18, 0.0  ;;  %v2650_v27 = vmax.f32 %v4355_v20, 0.0  ;;  %v4367_v19 = vadd.f32 %v2090_v55, %v1937_v47  ;;  %v4369_v28 = vadd.f32 %v2167_v23, %v1945_v63 }
 0x9b4   :  { %v2649_v29 = vmax.f32 %v4367_v19, 0.0  ;;  %v2651_v30 = vmax.f32 %v4369_v28, 0.0 }
 0x9b5   :  { %v2236_v33 = vpop.f32.mrf.mxu1  ;;  %v2313_v34 = vpop.f32.mrf.mxu0 }
 0x9b6   :  { %v4379_v35 = vadd.f32 %v2236_v33, %v1949_v24  ;;  %v4381_v36 = vadd.f32 %v2313_v34, %v1957_v25 }
 0x9b7   :  { %v2238_v37 = vpop.f32.mrf.mxu1  ;;  %v2315_v38 = vpop.f32.mrf.mxu0 }
 0x9b8   :  { %v2636_v40 = vmax.f32 %v4379_v35, 0.0  ;;  %v2638_v41 = vmax.f32 %v4381_v36, 0.0  ;;  %v4385_v44 = vadd.f32 %v2238_v37, %v1953_v31  ;;  %v4387_v57 = vadd.f32 %v2315_v38, %v1961_v32 }
 0x9ba   :  { %v2637_v45 = vmax.f32 %v4385_v44, 0.0  ;;  %v2639_v0 = vmax.f32 %v4387_v57, 0.0 }
 0x9bb   :  { %v2242_v43 = vpop.f32.mrf.mxu1  ;;  %v2319_v46 = vpop.f32.mrf.mxu0 }
 0x9bc   :  { %v4391_v48 = vadd.f32 %v2242_v43, %v1949_v24  ;;  %v4393_v49 = vadd.f32 %v2319_v46, %v1957_v25 }
 0x9bd   :  { %v2244_v50 = vpop.f32.mrf.mxu1  ;;  %v2321_v52 = vpop.f32.mrf.mxu0 }
 0x9be   :  { %v2652_v39 = vmax.f32 %v4391_v48, 0.0  ;;  %v2654_v47 = vmax.f32 %v4393_v49, 0.0  ;;  %v4400_v63 = vadd.f32 %v2244_v50, %v1953_v31  ;;  %v4402_v42 = vadd.f32 %v2321_v52, %v1961_v32 }
 0x9bf   :  { %v1981_v52 = vrot.slane %v4023_v1, %v1948_v14  ;;  %v1985_v14 = vrot.slane %v4023_v1, %v1952_v21 }
 0x9c0   :  { %v2653_v5 = vmax.f32 %v4400_v63, 0.0  ;;  %v2655_v8 = vmax.f32 %v4402_v42, 0.0 }
 0x9c1   :  { %v2390_v56 = vpop.f32.mrf.mxu1  ;;  %v2467_v17 = vpop.f32.mrf.mxu0 }
 0x9c2   :  { %v4412_v3 = vadd.f32 %v2390_v56, %v1965_v58  ;;  %v4414_v55 = vadd.f32 %v2467_v17, %v1973_v62  ;;  %v1989_v56 = vrot.slane %v4023_v1, %v1956_v4  ;;  %v1993_v4 = vrot.slane %v4023_v1, %v1960_v22 }
 0x9c3   :  { %v2392_v23 = vpop.f32.mrf.mxu1  ;;  %v2469_v24 = vpop.f32.mrf.mxu0 }
 0x9c4   :  { %v4418_v32 = vadd.f32 %v2392_v23, %v1969_v53  ;;  %v4420_v33 = vadd.f32 %v2469_v24, %v1977_v11 }
 0x9c7   :  { %v2396_v34 = vpop.f32.mrf.mxu1  ;;  %v2473_v37 = vpop.f32.mrf.mxu0 }
 0x9c8   :  { %v4424_v38 = vadd.f32 %v2396_v34, %v1965_v58  ;;  %v4426_v43 = vadd.f32 %v2473_v37, %v1973_v62 }
 0x9c9   :  { %v2398_v46 = vpop.f32.mrf.mxu1  ;;  %v2475_v50 = vpop.f32.mrf.mxu0 }
 0x9ca   :  { %v4436_v24 = vadd.f32 %v2398_v46, %v1969_v53  ;;  %v4438_v58 = vadd.f32 %v2475_v50, %v1977_v11 }
 0x9cd   :  { %v2544_v37 = vpop.f32.mrf.mxu1  ;;  %v2621_v17 = vpop.f32.mrf.mxu0 }
 0x9ce   :  { %v4448_v31 = vadd.f32 %v2544_v37, %v1981_v52  ;;  %v4450_v53 = vadd.f32 %v2621_v17, %v1989_v56 }
 0x9cf   :  { %v2546_v11 = vpop.f32.mrf.mxu1  ;;  %v2623_v46 = vpop.f32.mrf.mxu0 }
 0x9d0   :  { %v4454_v34 = vadd.f32 %v2546_v11, %v1985_v14  ;;  %v4456_v62 = vadd.f32 %v2623_v46, %v1993_v4 }
 0x9d1   :  { %v2550_v21 = vpop.f32.mrf.mxu1  ;;  %v2627_v10 = vpop.f32.mrf.mxu0 }
 0x9d2   :  { %v2647_v22 = vmax.f32 %v4456_v62, 0.0  ;;  %v4460_v37 = vadd.f32 %v2550_v21, %v1981_v52  ;;  %v4462_v17 = vadd.f32 %v2627_v10, %v1989_v56 }
 0x9d3   :  { %v2552_v25 = vpop.f32.mrf.mxu1  ;;  %v2629_v61 = vpop.f32.mrf.mxu0 }
 0x9d4   :  { %v2660_v50 = vmax.f32 %v4460_v37, 0.0  ;;  %v4466_v11 = vadd.f32 %v2552_v25, %v1985_v14  ;;  %v4468_v46 = vadd.f32 %v2629_v61, %v1993_v4 }
 0x9d6   :  { %v2661_v60 = vmax.f32 %v4466_v11, 0.0  ;;  %v2663_v1 = vmax.f32 %v4468_v46, 0.0 }
 0x9d7   :  { %3877 = dma.done.wait [#allocation4 + $0x1], 8192 }
 0x9d8   :  { %3878 = vsyncadd [#allocation4 + $0x1], 4294959104  ;;  %2800 = vmatprep.mubr.f32.mxu1 %v2633_v15  ;;  %2875 = vmatprep.mubr.f32.mxu0 %v2635_v16  ;;  %v2715_v52 = vld [vmem:[#allocation3 + $0x188] sm:$0xff]  ;;  %v2717_v56 = vld [vmem:[#allocation3 + $0x198] sm:$0xff]  ;;  %v4567_v63 = vmax.f32 %v4418_v32, 0.0  ;;  %v4568_v42 = vmax.f32 %v4420_v33, 0.0 }
 0x9d9   :  { %v2714_v21 = vld [vmem:[#allocation3 + $0x180] sm:$0xff]  ;;  %2760 = vmatprep.subr.mxu1 %v2715_v52  ;;  %2835 = vmatprep.subr.mxu0 %v2717_v56  ;;  %v2716_v25 = vld [vmem:[#allocation3 + $0x190] sm:$0xff]  ;;  %v2699_v61 = vld [vmem:[#allocation3 + $0x108] sm:$0xff]  ;;  %v4569_v32 = vmax.f32 %v4412_v3, 0.0  ;;  %v4570_v33 = vmax.f32 %v4414_v55, 0.0  ;;  %v4573_v3 = vmax.f32 %v4424_v38, 0.0 }
 0x9da   :  { %v2701_v14 = vld [vmem:[#allocation3 + $0x118] sm:$0xff]  ;;  %2761 = vmatpush1.xpose.msra.mxu1 %v2714_v21  ;;  %2836 = vmatpush1.xpose.msra.mxu0 %v2716_v25  ;;  %v2698_v4 = vld [vmem:[#allocation3 + $0x100] sm:$0xff]  ;;  %v2700_v10 = vld [vmem:[#allocation3 + $0x110] sm:$0xff]  ;;  %v4574_v55 = vmax.f32 %v4426_v43, 0.0  ;;  %v4578_v62 = vmax.f32 %v4462_v17, 0.0  ;;  %s3904_s12 = smov [#allocation19]  }
 0x9db   :  { %2762 = vmatprep.subr.mxu1 %v2699_v61  ;;  %2837 = vmatprep.subr.mxu0 %v2701_v14  ;;  %v2683_v23 = vld [vmem:[#allocation3 + $0x88] sm:$0xff]  ;;  %v2685_v12 = vld [vmem:[#allocation3 + $0x98] sm:$0xff]  ;;  %v2682_v13 = vld [vmem:[#allocation3 + $0x80] sm:$0xff]  ;;  %s3345_s13 = sshll.u32 %s3904_s12, 4  ;;  %s3346_s13 = int_to_ptr.vmem [resolvable:$true] %s3345_s13 }
 0x9dc   :  { %v2684_v15 = vld [vmem:[#allocation3 + $0x90] sm:$0xff]  ;;  %v2667_v16 = vld [vmem:[#allocation3 + $0x8] sm:$0xff]  ;;  %v2669_v52 = vld [vmem:[#allocation3 + $0x18] sm:$0xff]  ;;  %s3845_s8 = scalar_lea.vmem %s3346_s13, 256  ;;  %p3850_p9 = scmp.lt.s32.totalorder %s3346_s13, %s3346_s13 }
 0x9dd   :  { %v2666_v56 = vld [vmem:[#allocation3] sm:$0xff]  ;;  %v2668_v21 = vld [vmem:[#allocation3 + $0x10] sm:$0xff]  ;;  %v2719_v25 = vld [vmem:[#allocation3 + $0x1a8] sm:$0xff]  ;;  %p3846_p8 = scmp.ne.s32.totalorder %s3346_s13, %s3845_s8  ;;  %p3851_p10 = scmp.lt.s32.totalorder %s3845_s8, %s3845_s8 }
 0x9de   :  { %2763 = vmatpush1.xpose.msra.mxu1 %v2698_v4  ;;  %2838 = vmatpush1.xpose.msra.mxu0 %v2700_v10  ;;  %v2721_v61 = vld [vmem:[#allocation3 + $0x1b8] sm:$0xff]  ;;  %v2718_v14 = vld [vmem:[#allocation3 + $0x1a0] sm:$0xff]  ;;  %v2720_v4 = vld [vmem:[#allocation3 + $0x1b0] sm:$0xff] }
 0x9df   :  { %2764 = vmatprep.subr.mxu1 %v2683_v23  ;;  %2839 = vmatprep.subr.mxu0 %v2685_v12  ;;  %v2703_v23 = vld [vmem:[#allocation3 + $0x128] sm:$0xff]  ;;  %v2705_v10 = vld [vmem:[#allocation3 + $0x138] sm:$0xff]  ;;  %v2702_v12 = vld [vmem:[#allocation3 + $0x120] sm:$0xff]  ;;  %p3852_p11 = por %p3851_p10, %p3850_p9 }
 0x9e0   :  { %v2686_v59 = vld [vmem:[#allocation3 + $0xa0] sm:$0xff]  ;;  %v2688_v6 = vld [vmem:[#allocation3 + $0xb0] sm:$0xff] }
 0x9e1   :  { %v2670_v18 = vld [vmem:[#allocation3 + $0x20] sm:$0xff]  ;;  %v2672_v20 = vld [vmem:[#allocation3 + $0x30] sm:$0xff]  ;;  %p3853_p12 = pnand %p3852_p11, %p3846_p8 }
 0x9e2   :  { %2765 = vmatpush1.xpose.msra.mxu1 %v2682_v13  ;;  %2840 = vmatpush1.xpose.msra.mxu0 %v2684_v15  ;;  %v2704_v13 = vld [vmem:[#allocation3 + $0x130] sm:$0xff]  ;;  %v2687_v15 = vld [vmem:[#allocation3 + $0xa8] sm:$0xff]  ;;  %v2722_v19 = vld [vmem:[#allocation3 + $0x1c0] sm:$0xff] }
 0x9e3   :  { %2766 = vmatprep.subr.mxu1 %v2667_v16  ;;  %2841 = vmatprep.subr.mxu0 %v2669_v52  ;;  %v2689_v16 = vld [vmem:[#allocation3 + $0xb8] sm:$0xff]  ;;  %v2724_v28 = vld [vmem:[#allocation3 + $0x1d0] sm:$0xff]  ;;  %v2706_v44 = vld [vmem:[#allocation3 + $0x140] sm:$0xff] }
 0x9e4   :  { %v2708_v57 = vld [vmem:[#allocation3 + $0x150] sm:$0xff]  ;;  %v2690_v35 = vld [vmem:[#allocation3 + $0xc0] sm:$0xff]  ;;  %v2711_v52 = vld [vmem:[#allocation3 + $0x168] sm:$0xff] }
 0x9e5   :  { %v2692_v36 = vld [vmem:[#allocation3 + $0xd0] sm:$0xff]  ;;  %v2674_v48 = vld [vmem:[#allocation3 + $0x40] sm:$0xff] }
 0x9e6   :  { %2767 = vmatpush1.xpose.msra.mxu1 %v2666_v56  ;;  %2842 = vmatpush1.xpose.msra.mxu0 %v2668_v21  ;;  %v2676_v49 = vld [vmem:[#allocation3 + $0x50] sm:$0xff]  ;;  %v2713_v56 = vld [vmem:[#allocation3 + $0x178] sm:$0xff]  ;;  %v4571_v21 = vmax.f32 %v4436_v24, 0.0  ;;  %v2694_v24 = vld [vmem:[#allocation3 + $0xe0] sm:$0xff] }
 0x9e7   :  { %2910 = vmatprep.subr.mxu1 %v2719_v25  ;;  %2985 = vmatprep.subr.mxu0 %v2721_v61  ;;  %v2710_v25 = vld [vmem:[#allocation3 + $0x160] sm:$0xff]  ;;  %v2712_v61 = vld [vmem:[#allocation3 + $0x170] sm:$0xff] }
 0x9e8   :  { %v2678_v38 = vld [vmem:[#allocation3 + $0x60] sm:$0xff]  ;;  %v2680_v43 = vld [vmem:[#allocation3 + $0x70] sm:$0xff] }
 0x9e9   :  { %2801 = vmatmul.mubr.f32.vlgmr.msra.gmra.mxu1 %v2632_v54  ;;  %2876 = vmatmul.mubr.f32.vlgmr.msra.gmra.mxu0 %v2634_v51  ;;  %v2671_v54 = vld [vmem:[#allocation3 + $0x28] sm:$0xff]  ;;  %v2673_v51 = vld [vmem:[#allocation3 + $0x38] sm:$0xff] }
 0x9ea   :  { %2911 = vmatpush1.xpose.msra.mxu1 %v2718_v14  ;;  %2986 = vmatpush1.xpose.msra.mxu0 %v2720_v4  ;;  %v4572_v14 = vmax.f32 %v4438_v58, 0.0  ;;  %v2695_v4 = vld [vmem:[#allocation3 + $0xe8] sm:$0xff]  ;;  %v4576_v58 = vmax.f32 %v4448_v31, 0.0 }
 0x9eb   :  { %2912 = vmatprep.subr.mxu1 %v2703_v23  ;;  %2987 = vmatprep.subr.mxu0 %v2705_v10  ;;  %v2697_v23 = vld [vmem:[#allocation3 + $0xf8] sm:$0xff]  ;;  %v2696_v10 = vld [vmem:[#allocation3 + $0xf0] sm:$0xff] }
 0x9ec   :  { %2805 = vmatprep.mubr.f32.mxu1 %v2649_v29  ;;  %2880 = vmatprep.mubr.f32.mxu0 %v2651_v30  ;;  %v2707_v29 = vld [vmem:[#allocation3 + $0x148] sm:$0xff]  ;;  %v2709_v30 = vld [vmem:[#allocation3 + $0x158] sm:$0xff] }
 0x9ed   :  { %2806 = vmatmul.mubr.f32.gmra.mxu1 %v2648_v26  ;;  %2881 = vmatmul.mubr.f32.gmra.mxu0 %v2650_v27  ;;  %v2723_v26 = vld [vmem:[#allocation3 + $0x1c8] sm:$0xff]  ;;  %v2725_v27 = vld [vmem:[#allocation3 + $0x1d8] sm:$0xff] }
 0x9ee   :  { %2913 = vmatpush1.xpose.msra.mxu1 %v2702_v12  ;;  %2988 = vmatpush1.xpose.msra.mxu0 %v2704_v13  ;;  %v2679_v12 = vld [vmem:[#allocation3 + $0x68] sm:$0xff]  ;;  %v2681_v13 = vld [vmem:[#allocation3 + $0x78] sm:$0xff] }
 0x9ef   :  { %2914 = vmatprep.subr.mxu1 %v2687_v15  ;;  %2989 = vmatprep.subr.mxu0 %v2689_v16  ;;  %v4575_v15 = vmax.f32 %v4454_v34, 0.0  ;;  %v4577_v16 = vmax.f32 %v4450_v53, 0.0 }
 0x9f0   :  { %2950 = vmatprep.mubr.f32.mxu1 %v2637_v45  ;;  %3025 = vmatprep.mubr.f32.mxu0 %v2639_v0  ;;  %v2691_v45 = vld [vmem:[#allocation3 + $0xc8] sm:$0xff]  ;;  %v2693_v0 = vld [vmem:[#allocation3 + $0xd8] sm:$0xff] }
 0x9f2   :  { %2915 = vmatpush1.xpose.msra.mxu1 %v2686_v59  ;;  %2990 = vmatpush1.xpose.msra.mxu0 %v2688_v6 }
 0x9f3   :  { %2916 = vmatprep.subr.mxu1 %v2671_v54  ;;  %2991 = vmatprep.subr.mxu0 %v2673_v51 }
 0x9f6   :  { %2917 = vmatpush1.xpose.msra.mxu1 %v2670_v18  ;;  %2992 = vmatpush1.xpose.msra.mxu0 %v2672_v20 }
 0x9f7   :  { %3060 = vmatprep.subr.mxu1 %v2723_v26  ;;  %3135 = vmatprep.subr.mxu0 %v2725_v27 }
 0x9f9   :  { %2951 = vmatmul.mubr.f32.vlgmr.msra.gmra.mxu1 %v2636_v40  ;;  %3026 = vmatmul.mubr.f32.vlgmr.msra.gmra.mxu0 %v2638_v41  ;;  %v2675_v40 = vld [vmem:[#allocation3 + $0x48] sm:$0xff]  ;;  %v2677_v41 = vld [vmem:[#allocation3 + $0x58] sm:$0xff] }
 0x9fa   :  { %3061 = vmatpush1.xpose.msra.mxu1 %v2722_v19  ;;  %3136 = vmatpush1.xpose.msra.mxu0 %v2724_v28 }
 0x9fb   :  { %2955 = vmatprep.mubr.f32.mxu1 %v2653_v5  ;;  %3062 = vmatprep.subr.mxu1 %v2707_v29  ;;  %v2726_v5 = vld [vmem:[#allocation3 + $0x1e0] sm:$0xff] }
 0x9fc   :  { %3137 = vmatprep.subr.mxu0 %v2709_v30  ;;  %3030 = vmatprep.mubr.f32.mxu0 %v2655_v8  ;;  %v2728_v8 = vld [vmem:[#allocation3 + $0x1f0] sm:$0xff] }
 0x9fd   :  { %2956 = vmatmul.mubr.f32.gmra.mxu1 %v2652_v39  ;;  %3031 = vmatmul.mubr.f32.gmra.mxu0 %v2654_v47  ;;  %v2727_v39 = vld [vmem:[#allocation3 + $0x1e8] sm:$0xff]  ;;  %v2729_v47 = vld [vmem:[#allocation3 + $0x1f8] sm:$0xff] }
 0x9fe   :  { %3063 = vmatpush1.xpose.msra.mxu1 %v2706_v44  ;;  %3138 = vmatpush1.xpose.msra.mxu0 %v2708_v57 }
 0x9ff   :  { %3064 = vmatprep.subr.mxu1 %v2691_v45  ;;  %3139 = vmatprep.subr.mxu0 %v2693_v0 }
 0xa00   :  { %3100 = vmatprep.mubr.f32.mxu1 %v4567_v63  ;;  %3175 = vmatprep.mubr.f32.mxu0 %v4568_v42 }
 0xa02   :  { %3065 = vmatpush1.xpose.msra.mxu1 %v2690_v35  ;;  %3140 = vmatpush1.xpose.msra.mxu0 %v2692_v36 }
 0xa03   :  { %3066 = vmatprep.subr.mxu1 %v2675_v40  ;;  %3141 = vmatprep.subr.mxu0 %v2677_v41 }
 0xa06   :  { %3067 = vmatpush1.xpose.msra.mxu1 %v2674_v48  ;;  %3142 = vmatpush1.xpose.msra.mxu0 %v2676_v49 }
 0xa07   :  { %3210 = vmatprep.subr.mxu1 %v2727_v39  ;;  %3285 = vmatprep.subr.mxu0 %v2729_v47 }
 0xa09   :  { %3101 = vmatmul.mubr.f32.vlgmr.msra.gmra.mxu1 %v4569_v32  ;;  %3176 = vmatmul.mubr.f32.vlgmr.msra.gmra.mxu0 %v4570_v33 }
 0xa0a   :  { %3211 = vmatpush1.xpose.msra.mxu1 %v2726_v5  ;;  %3286 = vmatpush1.xpose.msra.mxu0 %v2728_v8 }
 0xa0b   :  { %3105 = vmatprep.mubr.f32.mxu1 %v4571_v21  ;;  %3212 = vmatprep.subr.mxu1 %v2711_v52 }
 0xa0c   :  { %3287 = vmatprep.subr.mxu0 %v2713_v56  ;;  %3180 = vmatprep.mubr.f32.mxu0 %v4572_v14 }
 0xa0d   :  { %3106 = vmatmul.mubr.f32.gmra.mxu1 %v4573_v3  ;;  %3181 = vmatmul.mubr.f32.gmra.mxu0 %v4574_v55 }
 0xa0e   :  { %3213 = vmatpush1.xpose.msra.mxu1 %v2710_v25  ;;  %3288 = vmatpush1.xpose.msra.mxu0 %v2712_v61 }
 0xa0f   :  { %3214 = vmatprep.subr.mxu1 %v2695_v4  ;;  %3289 = vmatprep.subr.mxu0 %v2697_v23 }
 0xa10   :  { %3250 = vmatprep.mubr.f32.mxu1 %v4575_v15  ;;  %3325 = vmatprep.mubr.f32.mxu0 %v2647_v22 }
 0xa12   :  { %3215 = vmatpush1.xpose.msra.mxu1 %v2694_v24  ;;  %3290 = vmatpush1.xpose.msra.mxu0 %v2696_v10 }
 0xa13   :  { %3216 = vmatprep.subr.mxu1 %v2679_v12  ;;  %3291 = vmatprep.subr.mxu0 %v2681_v13 }
 0xa16   :  { %3217 = vmatpush1.xpose.msra.mxu1 %v2678_v38  ;;  %3292 = vmatpush1.xpose.msra.mxu0 %v2680_v43 }
 0xa19   :  { %3251 = vmatmul.mubr.f32.vlgmr.msra.gmra.mxu1 %v4576_v58  ;;  %3326 = vmatmul.mubr.f32.vlgmr.msra.gmra.mxu0 %v4577_v16 }
 0xa1a   :  { %3255 = vmatprep.mubr.f32.mxu1 %v2661_v60  ;;  %3330 = vmatprep.mubr.f32.mxu0 %v2663_v1 }
 0xa1d   :  { %3256 = vmatmul.mubr.f32.gmra.mxu1 %v2660_v50  ;;  %3331 = vmatmul.mubr.f32.gmra.mxu0 %v4578_v62 }
 0xaa9   :  { %v2802_v34 = vpop.f32.mrf.mxu1  ;;  %v2877_v22 = vpop.f32.mrf.mxu0 }
 0xaaa   :  { %v2803_v50 = vadd.f32 %v4028_v2, %v2802_v34 }
 0xaab   :  { %v2804_v59 = vpop.f32.mrf.mxu1  ;;  %v2879_v31 = vpop.f32.mrf.mxu0 }
 0xaac   :  { %v2878_v29 = vadd.f32 %v2877_v22, %v2803_v50 }
 0xaad   :  { %v2807_v6 = vpop.f32.mrf.mxu1  ;;  %v2882_v54 = vpop.f32.mrf.mxu0 }
 0xaae   :  { %v2808_v30 = vadd.f32 %v4028_v2, %v2807_v6 }
 0xaaf   :  { %v2809_v53 = vpop.f32.mrf.mxu1  ;;  %v2884_v51 = vpop.f32.mrf.mxu0 }
 0xab0   :  { %v2883_v36 = vadd.f32 %v2882_v54, %v2808_v30 }
 0xab9   :  { %v2952_v18 = vpop.f32.mrf.mxu1  ;;  %v3027_v11 = vpop.f32.mrf.mxu0 }
 0xaba   :  { %v2953_v45 = vadd.f32 %v2952_v18, %v2878_v29 }
 0xabb   :  { %v2954_v60 = vpop.f32.mrf.mxu1  ;;  %v3029_v20 = vpop.f32.mrf.mxu0 }
 0xabc   :  { %v3028_v40 = vadd.f32 %v3027_v11, %v2953_v45 }
 0xabd   :  { %v2957_v46 = vpop.f32.mrf.mxu1  ;;  %v3032_v1 = vpop.f32.mrf.mxu0 }
 0xabe   :  { %v2958_v41 = vadd.f32 %v2957_v46, %v2883_v36 }
 0xabf   :  { %v2959_v26 = vpop.f32.mrf.mxu1  ;;  %v3034_v37 = vpop.f32.mrf.mxu0 }
 0xac0   :  { %v3033_v42 = vadd.f32 %v3032_v1, %v2958_v41 }
 0xac9   :  { %v3102_v17 = vpop.f32.mrf.mxu1  ;;  %v3177_v27 = vpop.f32.mrf.mxu0 }
 0xaca   :  { %v3103_v63 = vadd.f32 %v3102_v17, %v3028_v40 }
 0xacb   :  { %v3104_v19 = vpop.f32.mrf.mxu1  ;;  %v3179_v28 = vpop.f32.mrf.mxu0 }
 0xacc   :  { %v3178_v48 = vadd.f32 %v3177_v27, %v3103_v63 }
 0xacd   :  { %v3107_v44 = vpop.f32.mrf.mxu1  ;;  %v3182_v57 = vpop.f32.mrf.mxu0 }
 0xace   :  { %v3108_v49 = vadd.f32 %v3107_v44, %v3033_v42 }
 0xacf   :  { %v3109_v0 = vpop.f32.mrf.mxu1  ;;  %v3184_v35 = vpop.f32.mrf.mxu0 }
 0xad0   :  { %v3183_v32 = vadd.f32 %v3182_v57, %v3108_v49 }
 0xad9   :  { %v3252_v39 = vpop.f32.mrf.mxu1  ;;  %v3327_v47 = vpop.f32.mrf.mxu0 }
 0xada   :  { %v3253_v5 = vadd.f32 %v3252_v39, %v3178_v48 }
 0xadb   :  { %v3254_v8 = vpop.f32.mrf.mxu1  ;;  %v3329_v52 = vpop.f32.mrf.mxu0 }
 0xadc   :  { %v3328_v33 = vadd.f32 %v3327_v47, %v3253_v5 }
 0xadd   :  { %v3257_v2 = vpop.f32.mrf.mxu1  ;;  %v3332_v56 = vpop.f32.mrf.mxu0 }
 0xade   :  { %v3336_v21 = vadd.f32 %v3328_v33, %v4261_v9  ;;  %v3258_v25 = vadd.f32 %v3257_v2, %v3183_v32 }
 0xadf   :  { %v3259_v61 = vpop.f32.mrf.mxu1  ;;  %v3334_v14 = vpop.f32.mrf.mxu0 }
 0xae0   :  { %3338 = vst.msk [vmem:[#allocation19] sm:$0xff] %vm181_vm0, %v3336_v21  ;;  %v3333_v4 = vadd.f32 %v3332_v56, %v3258_v25 }
 0xae2   :  { %v3337_v23 = vadd.f32 %v3333_v4, %v4256_v7 }
 0xae4   :  { %3339 = vst.msk [vmem:[#allocation19 + $0x8] sm:$0xff] %vm181_vm0, %v3337_v23 }
 0xae5   :  { %3856 = shalt.err (!%p3853_p12)
}
 0xae6   :  { %3351 = dma.vmem_to_hbm [thread:$0]  %s3346_s13, 256, %s4562_s14, [#allocation7], %s3887_s5, %s3887_s5, %s3888_s19  }
 0xae7   :  { %3879 = dma.done.wait [#allocation7], 256  }
 0xae8   :  { %3880 = vsyncadd [#allocation7], 4294967040 }
 0xae9   :  { %3355 = vsyncpa [#allocation6], 1 }
 0xaea   :  { %3356 = vsyncpa [#allocation9], 1 }
 0xaeb   :  { %3357 = vsyncpa [#allocation12], 1 }
 0xaec   :  { %3358 = vsyncpa [#allocation15], 1 }
 0xaed   :  { %3359 = vsyncpa [#allocation18], 1 }
 0xaee   :  { %3360 = vsyncpa [#allocation7], 1 }
 0xaef   :  { %3361 = vsyncmov [#allocation4] }
 0xaf2   :  { %s3362_s26 = vpop.sfrf %3361 }
 0xaf3   :  { %p3425_p13 = scmp.ne.s32.totalorder %s3362_s26, 0 }
 0xaf5   :  { %3366 = shalt.err (%p3425_p13)  }
 0xaf6   :  { %3368 = vsyncmov [#allocation4 + $0x1] }
 0xaf9   :  { %s3369_s9 = vpop.sfrf %3368 }
 0xafa   :  { %p3426_p0 = scmp.ne.s32.totalorder %s3369_s9, 0 }
 0xafc   :  { %3373 = shalt.err (%p3426_p0)  }

</bundles_post_ra>
